<compile_context>
chip_gen: v6e
topology: v6e:2x2x1
jax: 0.10.0
libtpu: 0.0.40
codegen_flags: <defaults>
</compile_context>

<pallas_src>
import functools

import jax
import jax.numpy as jnp
from jax import lax
from jax.experimental import pallas as pl
from jax.experimental.pallas import tpu as pltpu


_VMEM = pl.BlockSpec(memory_space=pltpu.MemorySpace.VMEM)
_SMEM = pl.BlockSpec(memory_space=pltpu.MemorySpace.SMEM)


# ----------------------------------------------------------------------------
# In-kernel helpers
# ----------------------------------------------------------------------------
def _l2_normalize(v):
    # F.normalize(dim=-1): v / max(||v||, 1e-12) == v * rsqrt(max(||v||^2, 1e-24))
    sumsq = jnp.sum(v * v, axis=-1, keepdims=True)
    return v * lax.rsqrt(jnp.maximum(sumsq, 1e-24))


def _adapter(alpha_ref, x, wd_ref, wu_ref, vec_ref):
    """down_proj -> ReLU -> up_proj -> residual/alpha mix -> L2 normalize."""
    bott = wd_ref.shape[1]
    d_out = wu_ref.shape[1]
    b_down = vec_ref[0:1, 0:bott]                                    # packed row 0
    b_up = vec_ref[1:2, 0:d_out]                                     # packed row 1
    h = jnp.dot(x.astype(jnp.bfloat16), wd_ref[...],
                preferred_element_type=jnp.float32) + b_down
    h = jnp.maximum(h, 0.0)                                          # ReLU
    u = jnp.dot(h.astype(jnp.bfloat16), wu_ref[...],
                preferred_element_type=jnp.float32) + b_up
    # a*(u + x) + (1 - a)*x  ==  x + a*u   (one mul + one add instead of three)
    adapted = x + alpha_ref[0] * u
    return _l2_normalize(adapted)


# ----------------------------------------------------------------------------
# Kernels
# ----------------------------------------------------------------------------
def make_fused_train_kernel(num_gnn_layers, k_neighbors):
    """One kernel: adapter + Gram + in-kernel kNN adjacency + all GCN layers."""

    def kernel(alpha_ref, x_ref, wd_ref, wu_ref, *rest):
        wg_refs = rest[:num_gnn_layers]
        vec_ref = rest[num_gnn_layers]
        adapted_ref = rest[num_gnn_layers + 1]
        graph_ref = rest[num_gnn_layers + 2]

        x = x_ref[...]                                               # [B, 512] f32
        B = x.shape[0]

        # ---- adapter path (also the first return value) ----
        adapted = _adapter(alpha_ref, x, wd_ref, wu_ref, vec_ref)
        adapted_ref[...] = adapted

        # ---- cosine-similarity Gram (rows are unit norm -> sim == cosine) ----
        # Contract the last dims of both operands directly on the MXU.
        sim = lax.dot_general(adapted, adapted,
                              dimension_numbers=(((1,), (1,)), ((), ())),
                              preferred_element_type=jnp.float32)    # [B, B]

        # ---- in-kernel kNN top-k -> dense adjacency + self loops ----
        # knn_graph(loop=False): mask the diagonal; for unit-norm rows
        # Euclidean-kNN == cosine-kNN and the edge weight is the Gram entry.
        # A[i, j] = weight of edge (source j -> target i).
        row_ids = lax.broadcasted_iota(jnp.int32, (B, B), 0)
        col_ids = lax.broadcasted_iota(jnp.int32, (B, B), 1)
        diag = row_ids == col_ids
        colf = col_ids.astype(jnp.float32)
        neg = jnp.float32(-3.0e38)
        s = jnp.where(diag, neg, sim)
        A = jnp.where(diag, 1.0, 0.0).astype(jnp.float32)            # self loops, w=1
        for _ in range(k_neighbors):                                 # k unrolled steps
            m = jnp.max(s, axis=1, keepdims=True)                    # [B, 1]
            is_max = s == m
            # first-occurrence argmax (lowest column wins ties, like lax.top_k)
            first = jnp.min(jnp.where(is_max, colf, jnp.float32(B)),
                            axis=1, keepdims=True)
            sel = colf == first
            A = jnp.where(sel, m, A)                                 # weight = cosine
            s = jnp.where(sel, neg, s)                               # mask selected col

        # Symmetric GCN normalization folded into row scalings.
        # deg over the *target* index == row-sum of A (A[i, j] = edge j -> i).
        deg = jnp.sum(A, axis=1, keepdims=True)
        # PyG masks only deg == 0; a negative degree (possible with negative
        # cosine weights) would be NaN there -- we zero it instead.
        # TODO(synk): exact NaN parity for negative in-degree not reproduced.
        d = jnp.where(deg > 0.0, lax.rsqrt(deg), 0.0)                # [B, 1]

        # ---- GCN stack: (GCNConv -> LayerNorm -> ReLU -> L2) per layer ----
        xg = adapted
        for l in range(num_gnn_layers):
            w_ref = wg_refs[l]
            in_dim, out_dim = w_ref.shape
            r = 2 + 3 * l
            b_l = vec_ref[r:r + 1, 0:out_dim]
            gamma = vec_ref[r + 1:r + 2, 0:out_dim]
            beta = vec_ref[r + 2:r + 3, 0:out_dim]
            if out_dim <= in_dim:
                # Project to the narrow dim first, then aggregate.
                xw = jnp.dot(xg.astype(jnp.bfloat16), w_ref[...],
                             preferred_element_type=jnp.float32)
                agg = d * jnp.dot(A, d * xw, preferred_element_type=jnp.float32)
            else:
                # Aggregate in the narrow input dim first, then project up.
                ax = d * jnp.dot(A, d * xg, preferred_element_type=jnp.float32)
                agg = jnp.dot(ax.astype(jnp.bfloat16), w_ref[...],
                              preferred_element_type=jnp.float32)
            h = agg + b_l
            # LayerNorm (PyTorch default eps=1e-5, biased variance)
            mu = jnp.mean(h, axis=-1, keepdims=True)
            var = jnp.mean((h - mu) * (h - mu), axis=-1, keepdims=True)
            h = (h - mu) * lax.rsqrt(var + 1e-5) * gamma + beta
            h = jnp.maximum(h, 0.0)                                  # ReLU
            xg = _l2_normalize(h)
        graph_ref[...] = xg

    return kernel


def adapter_kernel(alpha_ref, x_ref, wd_ref, wu_ref, vec_ref, adapted_ref):
    """Inference path (training=False): adapter only."""
    adapted_ref[...] = _adapter(alpha_ref, x_ref[...], wd_ref, wu_ref, vec_ref)


# ----------------------------------------------------------------------------
# Wrappers (grid-less single-block pallas_call: ~1.4 MB total fits VMEM on
# every TPU generation; B=16 is a multiple of the f32 sublane count 8).
# ----------------------------------------------------------------------------
_COMPILER_PARAMS = pltpu.CompilerParams(vmem_limit_bytes=32 * 1024 * 1024)


def run_fused_train(alpha, x, w_down, w_up, w_gnn, vecs, k_neighbors):
    B, D = x.shape
    bott = w_down.shape[1]
    n_layers = len(w_gnn)
    flops = 4 * B * D * bott + 2 * B * B * D
    for w in w_gnn:
        di, do = w.shape
        flops += 2 * B * di * do + 2 * B * B * min(di, do)
    bytes_accessed = (4 * (3 * B * D) + 4 * int(vecs.size)
                      + 2 * (int(w_down.size) + int(w_up.size))
                      + 2 * sum(int(w.size) for w in w_gnn))
    kernel = make_fused_train_kernel(n_layers, k_neighbors)
    return pl.pallas_call(
        kernel,
        out_shape=(jax.ShapeDtypeStruct((B, D), jnp.float32),
                   jax.ShapeDtypeStruct((B, D), jnp.float32)),
        in_specs=[_SMEM, _VMEM, _VMEM, _VMEM] + [_VMEM] * n_layers + [_VMEM],
        out_specs=(_VMEM, _VMEM),
        compiler_params=_COMPILER_PARAMS,
        cost_estimate=pl.CostEstimate(flops=int(flops),
                                      transcendentals=int(B * (2 + 2 * n_layers)),
                                      bytes_accessed=int(bytes_accessed)),
    )(alpha, x, w_down, w_up, *w_gnn, vecs)


def run_adapter(alpha, x, w_down, w_up, vecs):
    B, D = x.shape
    bott = w_down.shape[1]
    flops = 4 * B * D * bott
    bytes_accessed = (4 * (2 * B * D) + 4 * int(vecs.size)
                      + 2 * (int(w_down.size) + int(w_up.size)))
    return pl.pallas_call(
        adapter_kernel,
        out_shape=jax.ShapeDtypeStruct((B, D), jnp.float32),
        in_specs=[_SMEM, _VMEM, _VMEM, _VMEM, _VMEM],
        out_specs=_VMEM,
        compiler_params=_COMPILER_PARAMS,
        cost_estimate=pl.CostEstimate(flops=int(flops), transcendentals=B,
                                      bytes_accessed=int(bytes_accessed)),
    )(alpha, x, w_down, w_up, vecs)


# ----------------------------------------------------------------------------
# Full forward
# ----------------------------------------------------------------------------
def clip_adapter_graph_forward(x, packed, k_neighbors, training=True):
    if not training:
        adapted = run_adapter(packed["alpha"], x, packed["w_down"],
                              packed["w_up"], packed["vecs"])
        return adapted, None
    adapted, x_graph = run_fused_train(packed["alpha"], x, packed["w_down"],
                                       packed["w_up"], packed["w_gnn"],
                                       packed["vecs"], k_neighbors)
    return adapted, x_graph


# ----------------------------------------------------------------------------
# Parameter construction (synthetic, matches module shapes) and one-time
# host-side packing (bf16 weight cast + vector packing).
# ----------------------------------------------------------------------------
def make_params(key, clip_dim=512, reduction_factor=8, gnn_hidden_dim=256,
                num_gnn_layers=2):
    bottleneck = clip_dim // reduction_factor
    keys = jax.random.split(key, 16)

    def dense(k, fan_in, fan_out):
        bound = 1.0 / jnp.sqrt(fan_in)
        kw, kb = jax.random.split(k)
        w = jax.random.uniform(kw, (fan_in, fan_out), jnp.float32, -bound, bound)
        b = jax.random.uniform(kb, (1, fan_out), jnp.float32, -bound, bound)
        return w, b

    w_down, b_down = dense(keys[0], clip_dim, bottleneck)
    w_up, b_up = dense(keys[1], bottleneck, clip_dim)

    dims = [clip_dim] + [gnn_hidden_dim] * (num_gnn_layers - 1) + [clip_dim]
    gnn = []
    for i in range(num_gnn_layers):
        w, b = dense(keys[2 + i], dims[i], dims[i + 1])
        gnn.append({"w": w, "b": b,
                    "gamma": jnp.ones((1, dims[i + 1]), jnp.float32),
                    "beta": jnp.zeros((1, dims[i + 1]), jnp.float32)})

    # NOTE: nn.Dropout(0.1) exists in __init__ but is never used in forward.
    return {"alpha": jnp.array([0.5], jnp.float32),
            "w_down": w_down, "b_down": b_down,
            "w_up": w_up, "b_up": b_up, "gnn": gnn}


def pack_params(params):
    """One-time prep: cast matmul weights to bf16 and pack every (1, N)
    bias / gamma / beta vector into a single f32 [2 + 3L, clip_dim] array."""
    gnn = params["gnn"]
    width = params["w_up"].shape[1]                      # clip_dim (widest vector)

    def pad_row(v):
        v = jnp.asarray(v, jnp.float32).reshape(1, -1)
        return jnp.pad(v, ((0, 0), (0, width - v.shape[1])))

    rows = [pad_row(params["b_down"]), pad_row(params["b_up"])]
    for layer in gnn:
        rows += [pad_row(layer["b"]), pad_row(layer["gamma"]), pad_row(layer["beta"])]

    return {
        "alpha": jnp.asarray(params["alpha"], jnp.float32).reshape(1),
        "w_down": params["w_down"].astype(jnp.bfloat16),
        "w_up": params["w_up"].astype(jnp.bfloat16),
        "w_gnn": [layer["w"].astype(jnp.bfloat16) for layer in gnn],
        "vecs": jnp.concatenate(rows, axis=0),
    }


if __name__ == "__main__":
    B = 16
    CLIP_DIM = 512       # fixed by the module
    K_NEIGHBORS = 10

    key = jax.random.PRNGKey(0)
    k_x, k_p = jax.random.split(key)
    x = jax.random.normal(k_x, (B, CLIP_DIM), dtype=jnp.float32)
    params = make_params(k_p, clip_dim=CLIP_DIM, reduction_factor=8,
                         gnn_hidden_dim=256, num_gnn_layers=2)
    packed = pack_params(params)

    fwd_train = jax.jit(functools.partial(clip_adapter_graph_forward,
                                          k_neighbors=K_NEIGHBORS, training=True))
    fwd_infer = jax.jit(functools.partial(clip_adapter_graph_forward,
                                          k_neighbors=K_NEIGHBORS, training=False))

    adapted, gnn_features = fwd_train(x, packed)
    jax.block_until_ready(adapted)
    jax.block_until_ready(gnn_features)
    adapted_inf, none_out = fwd_infer(x, packed)
    jax.block_until_ready(adapted_inf)

    assert adapted.shape == (B, CLIP_DIM)
    assert gnn_features.shape == (B, CLIP_DIM)
    assert adapted_inf.shape == (B, CLIP_DIM)
    assert none_out is None
    assert bool(jnp.all(jnp.isfinite(adapted)))
    assert bool(jnp.all(jnp.isfinite(gnn_features)))

    # Pure-JAX f32 reference for the adapter path (graph path is checked only
    # for shape/finiteness: bf16 MXU + top-k tie ordering make exact parity
    # with the f32 PyTorch reference a ~1e-2-tolerance comparison).
    def adapter_ref(xf, p):
        h = jnp.maximum(xf @ p["w_down"] + p["b_down"], 0.0)
        u = h @ p["w_up"] + p["b_up"]
        a = p["alpha"][0]
        ad = a * (u + xf) + (1.0 - a) * xf
        return ad / jnp.maximum(jnp.linalg.norm(ad, axis=-1, keepdims=True), 1e-12)

    ref = adapter_ref(x, params)
    assert float(jnp.max(jnp.abs(adapted - ref))) < 1e-2
    assert float(jnp.max(jnp.abs(adapted_inf - ref))) < 1e-2

    print("KERNEL_OK")
</pallas_src>

<mosaic_0001>
module attributes {stable_mosaic.version = 11 : i64} {
  func.func @kernel(%arg0: memref<1xf32, #tpu.memory_space<smem>>, %arg1: memref<16x512xf32, #tpu.memory_space<vmem>>, %arg2: memref<512x64xbf16, #tpu.memory_space<vmem>>, %arg3: memref<64x512xbf16, #tpu.memory_space<vmem>>, %arg4: memref<512x256xbf16, #tpu.memory_space<vmem>>, %arg5: memref<256x512xbf16, #tpu.memory_space<vmem>>, %arg6: memref<8x512xf32, #tpu.memory_space<vmem>>, %arg7: memref<16x512xf32, #tpu.memory_space<vmem>>, %arg8: memref<16x512xf32, #tpu.memory_space<vmem>>) attributes {dimension_semantics = [], scalar_prefetch = 0 : i64, scratch_operands = 0 : i64, tpu.core_type = #tpu.core_type<tc>} {
    %c0 = arith.constant 0 : index
    %c0_0 = arith.constant 0 : index
    %0 = vector.load %arg1[%c0, %c0_0] : memref<16x512xf32, #tpu.memory_space<vmem>>, vector<16x512xf32>
    %c0_1 = arith.constant 0 : index
    %c0_2 = arith.constant 0 : index
    %1 = vector.load %arg6[%c0_1, %c0_2] : memref<8x512xf32, #tpu.memory_space<vmem>>, vector<1x64xf32>
    %c1 = arith.constant 1 : index
    %c0_3 = arith.constant 0 : index
    %2 = vector.load %arg6[%c1, %c0_3] : memref<8x512xf32, #tpu.memory_space<vmem>>, vector<1x512xf32>
    %3 = arith.truncf %0 : vector<16x512xf32> to vector<16x512xbf16>
    %c0_4 = arith.constant 0 : index
    %c0_5 = arith.constant 0 : index
    %4 = vector.load %arg2[%c0_4, %c0_5] : memref<512x64xbf16, #tpu.memory_space<vmem>>, vector<512x64xbf16>
    %cst = arith.constant dense<0.000000e+00> : vector<16x64xf32>
    %5 = tpu.matmul %3, %4, %cst {dimension_numbers = #tpu.dot_dimension_numbers<[1], [0], [0], [1], [0, 0, 1, 1], [], []>} : vector<16x512xbf16>, vector<512x64xbf16>, vector<16x64xf32> -> vector<16x64xf32>
    %6 = vector.broadcast %1 : vector<1x64xf32> to vector<16x64xf32>
    %7 = arith.addf %5, %6 : vector<16x64xf32>
    %cst_6 = arith.constant 0.000000e+00 : f32
    %8 = vector.broadcast %cst_6 : f32 to vector<16x64xf32>
    %9 = arith.maximumf %7, %8 : vector<16x64xf32>
    %10 = arith.truncf %9 : vector<16x64xf32> to vector<16x64xbf16>
    %c0_7 = arith.constant 0 : index
    %c0_8 = arith.constant 0 : index
    %11 = vector.load %arg3[%c0_7, %c0_8] : memref<64x512xbf16, #tpu.memory_space<vmem>>, vector<64x512xbf16>
    %cst_9 = arith.constant dense<0.000000e+00> : vector<16x512xf32>
    %12 = tpu.matmul %10, %11, %cst_9 {dimension_numbers = #tpu.dot_dimension_numbers<[1], [0], [0], [1], [0, 0, 1, 1], [], []>} : vector<16x64xbf16>, vector<64x512xbf16>, vector<16x512xf32> -> vector<16x512xf32>
    %13 = vector.broadcast %2 : vector<1x512xf32> to vector<16x512xf32>
    %14 = arith.addf %12, %13 : vector<16x512xf32>
    %c0_10 = arith.constant 0 : index
    %15 = memref.load %arg0[%c0_10] : memref<1xf32, #tpu.memory_space<smem>>
    %16 = vector.broadcast %15 : f32 to vector<16x512xf32>
    %17 = arith.mulf %16, %14 : vector<16x512xf32>
    %18 = arith.addf %0, %17 : vector<16x512xf32>
    %19 = arith.mulf %18, %18 : vector<16x512xf32>
    %cst_11 = arith.constant dense<0.000000e+00> : vector<16xf32>
    %20 = vector.multi_reduction <add>, %19, %cst_11 [1] : vector<16x512xf32> to vector<16xf32>
    %21 = vector.shape_cast %20 : vector<16xf32> to vector<16x1xf32>
    %cst_12 = arith.constant 1.000000e-24 : f32
    %22 = vector.broadcast %cst_12 : f32 to vector<16x1xf32>
    %23 = arith.maximumf %21, %22 : vector<16x1xf32>
    %24 = math.rsqrt %23 : vector<16x1xf32>
    %25 = vector.broadcast %24 : vector<16x1xf32> to vector<16x512xf32>
    %26 = arith.mulf %18, %25 : vector<16x512xf32>
    %c0_13 = arith.constant 0 : index
    %c0_14 = arith.constant 0 : index
    %27 = vector.load %arg7[%c0_13, %c0_14] : memref<16x512xf32, #tpu.memory_space<vmem>>, vector<16x512xf32>
    tpu.vector_store %arg7[%c0_13, %c0_14], %26 {strides = array<i32>} : memref<16x512xf32, #tpu.memory_space<vmem>>, vector<16x512xf32>,
    %cst_15 = arith.constant dense<0.000000e+00> : vector<16x16xf32>
    %28 = tpu.matmul %26, %26, %cst_15 {dimension_numbers = #tpu.dot_dimension_numbers<[1], [1], [0], [0], [0, 0, 1, 0], [], []>} : vector<16x512xf32>, vector<16x512xf32>, vector<16x16xf32> -> vector<16x16xf32>
    %29 = tpu.iota {dimensions = array<i32: 0>} : vector<16x16xi32>
    %30 = tpu.iota {dimensions = array<i32: 1>} : vector<16x16xi32>
    %31 = arith.cmpi eq, %29, %30 : vector<16x16xi32>
    %32 = arith.sitofp %30 : vector<16x16xi32> to vector<16x16xf32>
    %cst_16 = arith.constant -3.000000e+38 : f32
    %33 = vector.broadcast %cst_16 : f32 to vector<16x16xf32>
    %34 = arith.select %31, %33, %28 : vector<16x16xi1>, vector<16x16xf32>
    %cst_17 = arith.constant 1.000000e+00 : f32
    %cst_18 = arith.constant 0.000000e+00 : f32
    %35 = vector.broadcast %cst_17 : f32 to vector<16x16xf32>
    %36 = vector.broadcast %cst_18 : f32 to vector<16x16xf32>
    %37 = arith.select %31, %35, %36 : vector<16x16xi1>, vector<16x16xf32>
    %cst_19 = arith.constant dense<0xFF800000> : vector<16xf32>
    %38 = vector.multi_reduction <maximumf>, %34, %cst_19 [1] : vector<16x16xf32> to vector<16xf32>
    %39 = vector.shape_cast %38 : vector<16xf32> to vector<16x1xf32>
    %40 = vector.broadcast %39 : vector<16x1xf32> to vector<16x16xf32>
    %41 = arith.cmpf oeq, %34, %40 : vector<16x16xf32>
    %cst_20 = arith.constant 1.600000e+01 : f32
    %42 = vector.broadcast %cst_20 : f32 to vector<16x16xf32>
    %43 = arith.select %41, %32, %42 : vector<16x16xi1>, vector<16x16xf32>
    %cst_21 = arith.constant dense<0x7F800000> : vector<16xf32>
    %44 = vector.multi_reduction <minimumf>, %43, %cst_21 [1] : vector<16x16xf32> to vector<16xf32>
    %45 = vector.shape_cast %44 : vector<16xf32> to vector<16x1xf32>
    %46 = vector.broadcast %45 : vector<16x1xf32> to vector<16x16xf32>
    %47 = arith.cmpf oeq, %32, %46 : vector<16x16xf32>
    %48 = vector.shape_cast %39 : vector<16x1xf32> to vector<16x1xf32>
    %49 = vector.broadcast %48 : vector<16x1xf32> to vector<16x16xf32>
    %50 = arith.select %47, %49, %37 : vector<16x16xi1>, vector<16x16xf32>
    %cst_22 = arith.constant -3.000000e+38 : f32
    %51 = vector.broadcast %cst_22 : f32 to vector<16x16xf32>
    %52 = arith.select %47, %51, %34 : vector<16x16xi1>, vector<16x16xf32>
    %cst_23 = arith.constant dense<0xFF800000> : vector<16xf32>
    %53 = vector.multi_reduction <maximumf>, %52, %cst_23 [1] : vector<16x16xf32> to vector<16xf32>
    %54 = vector.shape_cast %53 : vector<16xf32> to vector<16x1xf32>
    %55 = vector.broadcast %54 : vector<16x1xf32> to vector<16x16xf32>
    %56 = arith.cmpf oeq, %52, %55 : vector<16x16xf32>
    %cst_24 = arith.constant 1.600000e+01 : f32
    %57 = vector.broadcast %cst_24 : f32 to vector<16x16xf32>
    %58 = arith.select %56, %32, %57 : vector<16x16xi1>, vector<16x16xf32>
    %cst_25 = arith.constant dense<0x7F800000> : vector<16xf32>
    %59 = vector.multi_reduction <minimumf>, %58, %cst_25 [1] : vector<16x16xf32> to vector<16xf32>
    %60 = vector.shape_cast %59 : vector<16xf32> to vector<16x1xf32>
    %61 = vector.broadcast %60 : vector<16x1xf32> to vector<16x16xf32>
    %62 = arith.cmpf oeq, %32, %61 : vector<16x16xf32>
    %63 = vector.shape_cast %54 : vector<16x1xf32> to vector<16x1xf32>
    %64 = vector.broadcast %63 : vector<16x1xf32> to vector<16x16xf32>
    %65 = arith.select %62, %64, %50 : vector<16x16xi1>, vector<16x16xf32>
    %cst_26 = arith.constant -3.000000e+38 : f32
    %66 = vector.broadcast %cst_26 : f32 to vector<16x16xf32>
    %67 = arith.select %62, %66, %52 : vector<16x16xi1>, vector<16x16xf32>
    %cst_27 = arith.constant dense<0xFF800000> : vector<16xf32>
    %68 = vector.multi_reduction <maximumf>, %67, %cst_27 [1] : vector<16x16xf32> to vector<16xf32>
    %69 = vector.shape_cast %68 : vector<16xf32> to vector<16x1xf32>
    %70 = vector.broadcast %69 : vector<16x1xf32> to vector<16x16xf32>
    %71 = arith.cmpf oeq, %67, %70 : vector<16x16xf32>
    %cst_28 = arith.constant 1.600000e+01 : f32
    %72 = vector.broadcast %cst_28 : f32 to vector<16x16xf32>
    %73 = arith.select %71, %32, %72 : vector<16x16xi1>, vector<16x16xf32>
    %cst_29 = arith.constant dense<0x7F800000> : vector<16xf32>
    %74 = vector.multi_reduction <minimumf>, %73, %cst_29 [1] : vector<16x16xf32> to vector<16xf32>
    %75 = vector.shape_cast %74 : vector<16xf32> to vector<16x1xf32>
    %76 = vector.broadcast %75 : vector<16x1xf32> to vector<16x16xf32>
    %77 = arith.cmpf oeq, %32, %76 : vector<16x16xf32>
    %78 = vector.shape_cast %69 : vector<16x1xf32> to vector<16x1xf32>
    %79 = vector.broadcast %78 : vector<16x1xf32> to vector<16x16xf32>
    %80 = arith.select %77, %79, %65 : vector<16x16xi1>, vector<16x16xf32>
    %cst_30 = arith.constant -3.000000e+38 : f32
    %81 = vector.broadcast %cst_30 : f32 to vector<16x16xf32>
    %82 = arith.select %77, %81, %67 : vector<16x16xi1>, vector<16x16xf32>
    %cst_31 = arith.constant dense<0xFF800000> : vector<16xf32>
    %83 = vector.multi_reduction <maximumf>, %82, %cst_31 [1] : vector<16x16xf32> to vector<16xf32>
    %84 = vector.shape_cast %83 : vector<16xf32> to vector<16x1xf32>
    %85 = vector.broadcast %84 : vector<16x1xf32> to vector<16x16xf32>
    %86 = arith.cmpf oeq, %82, %85 : vector<16x16xf32>
    %cst_32 = arith.constant 1.600000e+01 : f32
    %87 = vector.broadcast %cst_32 : f32 to vector<16x16xf32>
    %88 = arith.select %86, %32, %87 : vector<16x16xi1>, vector<16x16xf32>
    %cst_33 = arith.constant dense<0x7F800000> : vector<16xf32>
    %89 = vector.multi_reduction <minimumf>, %88, %cst_33 [1] : vector<16x16xf32> to vector<16xf32>
    %90 = vector.shape_cast %89 : vector<16xf32> to vector<16x1xf32>
    %91 = vector.broadcast %90 : vector<16x1xf32> to vector<16x16xf32>
    %92 = arith.cmpf oeq, %32, %91 : vector<16x16xf32>
    %93 = vector.shape_cast %84 : vector<16x1xf32> to vector<16x1xf32>
    %94 = vector.broadcast %93 : vector<16x1xf32> to vector<16x16xf32>
    %95 = arith.select %92, %94, %80 : vector<16x16xi1>, vector<16x16xf32>
    %cst_34 = arith.constant -3.000000e+38 : f32
    %96 = vector.broadcast %cst_34 : f32 to vector<16x16xf32>
    %97 = arith.select %92, %96, %82 : vector<16x16xi1>, vector<16x16xf32>
    %cst_35 = arith.constant dense<0xFF800000> : vector<16xf32>
    %98 = vector.multi_reduction <maximumf>, %97, %cst_35 [1] : vector<16x16xf32> to vector<16xf32>
    %99 = vector.shape_cast %98 : vector<16xf32> to vector<16x1xf32>
    %100 = vector.broadcast %99 : vector<16x1xf32> to vector<16x16xf32>
    %101 = arith.cmpf oeq, %97, %100 : vector<16x16xf32>
    %cst_36 = arith.constant 1.600000e+01 : f32
    %102 = vector.broadcast %cst_36 : f32 to vector<16x16xf32>
    %103 = arith.select %101, %32, %102 : vector<16x16xi1>, vector<16x16xf32>
    %cst_37 = arith.constant dense<0x7F800000> : vector<16xf32>
    %104 = vector.multi_reduction <minimumf>, %103, %cst_37 [1] : vector<16x16xf32> to vector<16xf32>
    %105 = vector.shape_cast %104 : vector<16xf32> to vector<16x1xf32>
    %106 = vector.broadcast %105 : vector<16x1xf32> to vector<16x16xf32>
    %107 = arith.cmpf oeq, %32, %106 : vector<16x16xf32>
    %108 = vector.shape_cast %99 : vector<16x1xf32> to vector<16x1xf32>
    %109 = vector.broadcast %108 : vector<16x1xf32> to vector<16x16xf32>
    %110 = arith.select %107, %109, %95 : vector<16x16xi1>, vector<16x16xf32>
    %cst_38 = arith.constant -3.000000e+38 : f32
    %111 = vector.broadcast %cst_38 : f32 to vector<16x16xf32>
    %112 = arith.select %107, %111, %97 : vector<16x16xi1>, vector<16x16xf32>
    %cst_39 = arith.constant dense<0xFF800000> : vector<16xf32>
    %113 = vector.multi_reduction <maximumf>, %112, %cst_39 [1] : vector<16x16xf32> to vector<16xf32>
    %114 = vector.shape_cast %113 : vector<16xf32> to vector<16x1xf32>
    %115 = vector.broadcast %114 : vector<16x1xf32> to vector<16x16xf32>
    %116 = arith.cmpf oeq, %112, %115 : vector<16x16xf32>
    %cst_40 = arith.constant 1.600000e+01 : f32
    %117 = vector.broadcast %cst_40 : f32 to vector<16x16xf32>
    %118 = arith.select %116, %32, %117 : vector<16x16xi1>, vector<16x16xf32>
    %cst_41 = arith.constant dense<0x7F800000> : vector<16xf32>
    %119 = vector.multi_reduction <minimumf>, %118, %cst_41 [1] : vector<16x16xf32> to vector<16xf32>
    %120 = vector.shape_cast %119 : vector<16xf32> to vector<16x1xf32>
    %121 = vector.broadcast %120 : vector<16x1xf32> to vector<16x16xf32>
    %122 = arith.cmpf oeq, %32, %121 : vector<16x16xf32>
    %123 = vector.shape_cast %114 : vector<16x1xf32> to vector<16x1xf32>
    %124 = vector.broadcast %123 : vector<16x1xf32> to vector<16x16xf32>
    %125 = arith.select %122, %124, %110 : vector<16x16xi1>, vector<16x16xf32>
    %cst_42 = arith.constant -3.000000e+38 : f32
    %126 = vector.broadcast %cst_42 : f32 to vector<16x16xf32>
    %127 = arith.select %122, %126, %112 : vector<16x16xi1>, vector<16x16xf32>
    %cst_43 = arith.constant dense<0xFF800000> : vector<16xf32>
    %128 = vector.multi_reduction <maximumf>, %127, %cst_43 [1] : vector<16x16xf32> to vector<16xf32>
    %129 = vector.shape_cast %128 : vector<16xf32> to vector<16x1xf32>
    %130 = vector.broadcast %129 : vector<16x1xf32> to vector<16x16xf32>
    %131 = arith.cmpf oeq, %127, %130 : vector<16x16xf32>
    %cst_44 = arith.constant 1.600000e+01 : f32
    %132 = vector.broadcast %cst_44 : f32 to vector<16x16xf32>
    %133 = arith.select %131, %32, %132 : vector<16x16xi1>, vector<16x16xf32>
    %cst_45 = arith.constant dense<0x7F800000> : vector<16xf32>
    %134 = vector.multi_reduction <minimumf>, %133, %cst_45 [1] : vector<16x16xf32> to vector<16xf32>
    %135 = vector.shape_cast %134 : vector<16xf32> to vector<16x1xf32>
    %136 = vector.broadcast %135 : vector<16x1xf32> to vector<16x16xf32>
    %137 = arith.cmpf oeq, %32, %136 : vector<16x16xf32>
    %138 = vector.shape_cast %129 : vector<16x1xf32> to vector<16x1xf32>
    %139 = vector.broadcast %138 : vector<16x1xf32> to vector<16x16xf32>
    %140 = arith.select %137, %139, %125 : vector<16x16xi1>, vector<16x16xf32>
    %cst_46 = arith.constant -3.000000e+38 : f32
    %141 = vector.broadcast %cst_46 : f32 to vector<16x16xf32>
    %142 = arith.select %137, %141, %127 : vector<16x16xi1>, vector<16x16xf32>
    %cst_47 = arith.constant dense<0xFF800000> : vector<16xf32>
    %143 = vector.multi_reduction <maximumf>, %142, %cst_47 [1] : vector<16x16xf32> to vector<16xf32>
    %144 = vector.shape_cast %143 : vector<16xf32> to vector<16x1xf32>
    %145 = vector.broadcast %144 : vector<16x1xf32> to vector<16x16xf32>
    %146 = arith.cmpf oeq, %142, %145 : vector<16x16xf32>
    %cst_48 = arith.constant 1.600000e+01 : f32
    %147 = vector.broadcast %cst_48 : f32 to vector<16x16xf32>
    %148 = arith.select %146, %32, %147 : vector<16x16xi1>, vector<16x16xf32>
    %cst_49 = arith.constant dense<0x7F800000> : vector<16xf32>
    %149 = vector.multi_reduction <minimumf>, %148, %cst_49 [1] : vector<16x16xf32> to vector<16xf32>
    %150 = vector.shape_cast %149 : vector<16xf32> to vector<16x1xf32>
    %151 = vector.broadcast %150 : vector<16x1xf32> to vector<16x16xf32>
    %152 = arith.cmpf oeq, %32, %151 : vector<16x16xf32>
    %153 = vector.shape_cast %144 : vector<16x1xf32> to vector<16x1xf32>
    %154 = vector.broadcast %153 : vector<16x1xf32> to vector<16x16xf32>
    %155 = arith.select %152, %154, %140 : vector<16x16xi1>, vector<16x16xf32>
    %cst_50 = arith.constant -3.000000e+38 : f32
    %156 = vector.broadcast %cst_50 : f32 to vector<16x16xf32>
    %157 = arith.select %152, %156, %142 : vector<16x16xi1>, vector<16x16xf32>
    %cst_51 = arith.constant dense<0xFF800000> : vector<16xf32>
    %158 = vector.multi_reduction <maximumf>, %157, %cst_51 [1] : vector<16x16xf32> to vector<16xf32>
    %159 = vector.shape_cast %158 : vector<16xf32> to vector<16x1xf32>
    %160 = vector.broadcast %159 : vector<16x1xf32> to vector<16x16xf32>
    %161 = arith.cmpf oeq, %157, %160 : vector<16x16xf32>
    %cst_52 = arith.constant 1.600000e+01 : f32
    %162 = vector.broadcast %cst_52 : f32 to vector<16x16xf32>
    %163 = arith.select %161, %32, %162 : vector<16x16xi1>, vector<16x16xf32>
    %cst_53 = arith.constant dense<0x7F800000> : vector<16xf32>
    %164 = vector.multi_reduction <minimumf>, %163, %cst_53 [1] : vector<16x16xf32> to vector<16xf32>
    %165 = vector.shape_cast %164 : vector<16xf32> to vector<16x1xf32>
    %166 = vector.broadcast %165 : vector<16x1xf32> to vector<16x16xf32>
    %167 = arith.cmpf oeq, %32, %166 : vector<16x16xf32>
    %168 = vector.shape_cast %159 : vector<16x1xf32> to vector<16x1xf32>
    %169 = vector.broadcast %168 : vector<16x1xf32> to vector<16x16xf32>
    %170 = arith.select %167, %169, %155 : vector<16x16xi1>, vector<16x16xf32>
    %cst_54 = arith.constant -3.000000e+38 : f32
    %171 = vector.broadcast %cst_54 : f32 to vector<16x16xf32>
    %172 = arith.select %167, %171, %157 : vector<16x16xi1>, vector<16x16xf32>
    %cst_55 = arith.constant dense<0xFF800000> : vector<16xf32>
    %173 = vector.multi_reduction <maximumf>, %172, %cst_55 [1] : vector<16x16xf32> to vector<16xf32>
    %174 = vector.shape_cast %173 : vector<16xf32> to vector<16x1xf32>
    %175 = vector.broadcast %174 : vector<16x1xf32> to vector<16x16xf32>
    %176 = arith.cmpf oeq, %172, %175 : vector<16x16xf32>
    %cst_56 = arith.constant 1.600000e+01 : f32
    %177 = vector.broadcast %cst_56 : f32 to vector<16x16xf32>
    %178 = arith.select %176, %32, %177 : vector<16x16xi1>, vector<16x16xf32>
    %cst_57 = arith.constant dense<0x7F800000> : vector<16xf32>
    %179 = vector.multi_reduction <minimumf>, %178, %cst_57 [1] : vector<16x16xf32> to vector<16xf32>
    %180 = vector.shape_cast %179 : vector<16xf32> to vector<16x1xf32>
    %181 = vector.broadcast %180 : vector<16x1xf32> to vector<16x16xf32>
    %182 = arith.cmpf oeq, %32, %181 : vector<16x16xf32>
    %183 = vector.shape_cast %174 : vector<16x1xf32> to vector<16x1xf32>
    %184 = vector.broadcast %183 : vector<16x1xf32> to vector<16x16xf32>
    %185 = arith.select %182, %184, %170 : vector<16x16xi1>, vector<16x16xf32>
    %cst_58 = arith.constant dense<0.000000e+00> : vector<16xf32>
    %186 = vector.multi_reduction <add>, %185, %cst_58 [1] : vector<16x16xf32> to vector<16xf32>
    %187 = vector.shape_cast %186 : vector<16xf32> to vector<16x1xf32>
    %cst_59 = arith.constant 0.000000e+00 : f32
    %188 = vector.broadcast %cst_59 : f32 to vector<16x1xf32>
    %189 = arith.cmpf ogt, %187, %188 : vector<16x1xf32>
    %190 = math.rsqrt %187 : vector<16x1xf32>
    %cst_60 = arith.constant 0.000000e+00 : f32
    %191 = vector.broadcast %cst_60 : f32 to vector<16x1xf32>
    %192 = arith.select %189, %190, %191 : vector<16x1xi1>, vector<16x1xf32>
    %c2 = arith.constant 2 : index
    %c0_61 = arith.constant 0 : index
    %193 = vector.load %arg6[%c2, %c0_61] : memref<8x512xf32, #tpu.memory_space<vmem>>, vector<1x256xf32>
    %c3 = arith.constant 3 : index
    %c0_62 = arith.constant 0 : index
    %194 = vector.load %arg6[%c3, %c0_62] : memref<8x512xf32, #tpu.memory_space<vmem>>, vector<1x256xf32>
    %c4 = arith.constant 4 : index
    %c0_63 = arith.constant 0 : index
    %195 = vector.load %arg6[%c4, %c0_63] : memref<8x512xf32, #tpu.memory_space<vmem>>, vector<1x256xf32>
    %196 = arith.truncf %26 : vector<16x512xf32> to vector<16x512xbf16>
    %c0_64 = arith.constant 0 : index
    %c0_65 = arith.constant 0 : index
    %197 = vector.load %arg4[%c0_64, %c0_65] : memref<512x256xbf16, #tpu.memory_space<vmem>>, vector<512x256xbf16>
    %cst_66 = arith.constant dense<0.000000e+00> : vector<16x256xf32>
    %198 = tpu.matmul %196, %197, %cst_66 {dimension_numbers = #tpu.dot_dimension_numbers<[1], [0], [0], [1], [0, 0, 1, 1], [], []>} : vector<16x512xbf16>, vector<512x256xbf16>, vector<16x256xf32> -> vector<16x256xf32>
    %199 = vector.broadcast %192 : vector<16x1xf32> to vector<16x256xf32>
    %200 = arith.mulf %199, %198 : vector<16x256xf32>
    %cst_67 = arith.constant dense<0.000000e+00> : vector<16x256xf32>
    %201 = tpu.matmul %185, %200, %cst_67 {dimension_numbers = #tpu.dot_dimension_numbers<[1], [0], [0], [1], [0, 0, 1, 1], [], []>} : vector<16x16xf32>, vector<16x256xf32>, vector<16x256xf32> -> vector<16x256xf32>
    %202 = vector.broadcast %192 : vector<16x1xf32> to vector<16x256xf32>
    %203 = arith.mulf %202, %201 : vector<16x256xf32>
    %204 = vector.broadcast %193 : vector<1x256xf32> to vector<16x256xf32>
    %205 = arith.addf %203, %204 : vector<16x256xf32>
    %cst_68 = arith.constant dense<0.000000e+00> : vector<16xf32>
    %206 = vector.multi_reduction <add>, %205, %cst_68 [1] : vector<16x256xf32> to vector<16xf32>
    %207 = vector.shape_cast %206 : vector<16xf32> to vector<16x1xf32>
    %cst_69 = arith.constant 2.560000e+02 : f32
    %208 = vector.broadcast %cst_69 : f32 to vector<16x1xf32>
    %209 = arith.divf %207, %208 : vector<16x1xf32>
    %210 = vector.broadcast %209 : vector<16x1xf32> to vector<16x256xf32>
    %211 = arith.subf %205, %210 : vector<16x256xf32>
    %212 = vector.broadcast %209 : vector<16x1xf32> to vector<16x256xf32>
    %213 = arith.subf %205, %212 : vector<16x256xf32>
    %214 = arith.mulf %211, %213 : vector<16x256xf32>
    %cst_70 = arith.constant dense<0.000000e+00> : vector<16xf32>
    %215 = vector.multi_reduction <add>, %214, %cst_70 [1] : vector<16x256xf32> to vector<16xf32>
    %216 = vector.shape_cast %215 : vector<16xf32> to vector<16x1xf32>
    %cst_71 = arith.constant 2.560000e+02 : f32
    %217 = vector.broadcast %cst_71 : f32 to vector<16x1xf32>
    %218 = arith.divf %216, %217 : vector<16x1xf32>
    %219 = vector.broadcast %209 : vector<16x1xf32> to vector<16x256xf32>
    %220 = arith.subf %205, %219 : vector<16x256xf32>
    %cst_72 = arith.constant 9.99999974E-6 : f32
    %221 = vector.broadcast %cst_72 : f32 to vector<16x1xf32>
    %222 = arith.addf %218, %221 : vector<16x1xf32>
    %223 = math.rsqrt %222 : vector<16x1xf32>
    %224 = vector.broadcast %223 : vector<16x1xf32> to vector<16x256xf32>
    %225 = arith.mulf %220, %224 : vector<16x256xf32>
    %226 = vector.broadcast %194 : vector<1x256xf32> to vector<16x256xf32>
    %227 = arith.mulf %225, %226 : vector<16x256xf32>
    %228 = vector.broadcast %195 : vector<1x256xf32> to vector<16x256xf32>
    %229 = arith.addf %227, %228 : vector<16x256xf32>
    %cst_73 = arith.constant 0.000000e+00 : f32
    %230 = vector.broadcast %cst_73 : f32 to vector<16x256xf32>
    %231 = arith.maximumf %229, %230 : vector<16x256xf32>
    %232 = arith.mulf %231, %231 : vector<16x256xf32>
    %cst_74 = arith.constant dense<0.000000e+00> : vector<16xf32>
    %233 = vector.multi_reduction <add>, %232, %cst_74 [1] : vector<16x256xf32> to vector<16xf32>
    %234 = vector.shape_cast %233 : vector<16xf32> to vector<16x1xf32>
    %cst_75 = arith.constant 1.000000e-24 : f32
    %235 = vector.broadcast %cst_75 : f32 to vector<16x1xf32>
    %236 = arith.maximumf %234, %235 : vector<16x1xf32>
    %237 = math.rsqrt %236 : vector<16x1xf32>
    %238 = vector.broadcast %237 : vector<16x1xf32> to vector<16x256xf32>
    %239 = arith.mulf %231, %238 : vector<16x256xf32>
    %c5 = arith.constant 5 : index
    %c0_76 = arith.constant 0 : index
    %240 = vector.load %arg6[%c5, %c0_76] : memref<8x512xf32, #tpu.memory_space<vmem>>, vector<1x512xf32>
    %c6 = arith.constant 6 : index
    %c0_77 = arith.constant 0 : index
    %241 = vector.load %arg6[%c6, %c0_77] : memref<8x512xf32, #tpu.memory_space<vmem>>, vector<1x512xf32>
    %c7 = arith.constant 7 : index
    %c0_78 = arith.constant 0 : index
    %242 = vector.load %arg6[%c7, %c0_78] : memref<8x512xf32, #tpu.memory_space<vmem>>, vector<1x512xf32>
    %243 = vector.broadcast %192 : vector<16x1xf32> to vector<16x256xf32>
    %244 = arith.mulf %243, %239 : vector<16x256xf32>
    %cst_79 = arith.constant dense<0.000000e+00> : vector<16x256xf32>
    %245 = tpu.matmul %185, %244, %cst_79 {dimension_numbers = #tpu.dot_dimension_numbers<[1], [0], [0], [1], [0, 0, 1, 1], [], []>} : vector<16x16xf32>, vector<16x256xf32>, vector<16x256xf32> -> vector<16x256xf32>
    %246 = vector.broadcast %192 : vector<16x1xf32> to vector<16x256xf32>
    %247 = arith.mulf %246, %245 : vector<16x256xf32>
    %248 = arith.truncf %247 : vector<16x256xf32> to vector<16x256xbf16>
    %c0_80 = arith.constant 0 : index
    %c0_81 = arith.constant 0 : index
    %249 = vector.load %arg5[%c0_80, %c0_81] : memref<256x512xbf16, #tpu.memory_space<vmem>>, vector<256x512xbf16>
    %cst_82 = arith.constant dense<0.000000e+00> : vector<16x512xf32>
    %250 = tpu.matmul %248, %249, %cst_82 {dimension_numbers = #tpu.dot_dimension_numbers<[1], [0], [0], [1], [0, 0, 1, 1], [], []>} : vector<16x256xbf16>, vector<256x512xbf16>, vector<16x512xf32> -> vector<16x512xf32>
    %251 = vector.broadcast %240 : vector<1x512xf32> to vector<16x512xf32>
    %252 = arith.addf %250, %251 : vector<16x512xf32>
    %cst_83 = arith.constant dense<0.000000e+00> : vector<16xf32>
    %253 = vector.multi_reduction <add>, %252, %cst_83 [1] : vector<16x512xf32> to vector<16xf32>
    %254 = vector.shape_cast %253 : vector<16xf32> to vector<16x1xf32>
    %cst_84 = arith.constant 5.120000e+02 : f32
    %255 = vector.broadcast %cst_84 : f32 to vector<16x1xf32>
    %256 = arith.divf %254, %255 : vector<16x1xf32>
    %257 = vector.broadcast %256 : vector<16x1xf32> to vector<16x512xf32>
    %258 = arith.subf %252, %257 : vector<16x512xf32>
    %259 = vector.broadcast %256 : vector<16x1xf32> to vector<16x512xf32>
    %260 = arith.subf %252, %259 : vector<16x512xf32>
    %261 = arith.mulf %258, %260 : vector<16x512xf32>
    %cst_85 = arith.constant dense<0.000000e+00> : vector<16xf32>
    %262 = vector.multi_reduction <add>, %261, %cst_85 [1] : vector<16x512xf32> to vector<16xf32>
    %263 = vector.shape_cast %262 : vector<16xf32> to vector<16x1xf32>
    %cst_86 = arith.constant 5.120000e+02 : f32
    %264 = vector.broadcast %cst_86 : f32 to vector<16x1xf32>
    %265 = arith.divf %263, %264 : vector<16x1xf32>
    %266 = vector.broadcast %256 : vector<16x1xf32> to vector<16x512xf32>
    %267 = arith.subf %252, %266 : vector<16x512xf32>
    %cst_87 = arith.constant 9.99999974E-6 : f32
    %268 = vector.broadcast %cst_87 : f32 to vector<16x1xf32>
    %269 = arith.addf %265, %268 : vector<16x1xf32>
    %270 = math.rsqrt %269 : vector<16x1xf32>
    %271 = vector.broadcast %270 : vector<16x1xf32> to vector<16x512xf32>
    %272 = arith.mulf %267, %271 : vector<16x512xf32>
    %273 = vector.broadcast %241 : vector<1x512xf32> to vector<16x512xf32>
    %274 = arith.mulf %272, %273 : vector<16x512xf32>
    %275 = vector.broadcast %242 : vector<1x512xf32> to vector<16x512xf32>
    %276 = arith.addf %274, %275 : vector<16x512xf32>
    %cst_88 = arith.constant 0.000000e+00 : f32
    %277 = vector.broadcast %cst_88 : f32 to vector<16x512xf32>
    %278 = arith.maximumf %276, %277 : vector<16x512xf32>
    %279 = arith.mulf %278, %278 : vector<16x512xf32>
    %cst_89 = arith.constant dense<0.000000e+00> : vector<16xf32>
    %280 = vector.multi_reduction <add>, %279, %cst_89 [1] : vector<16x512xf32> to vector<16xf32>
    %281 = vector.shape_cast %280 : vector<16xf32> to vector<16x1xf32>
    %cst_90 = arith.constant 1.000000e-24 : f32
    %282 = vector.broadcast %cst_90 : f32 to vector<16x1xf32>
    %283 = arith.maximumf %281, %282 : vector<16x1xf32>
    %284 = math.rsqrt %283 : vector<16x1xf32>
    %285 = vector.broadcast %284 : vector<16x1xf32> to vector<16x512xf32>
    %286 = arith.mulf %278, %285 : vector<16x512xf32>
    %c0_91 = arith.constant 0 : index
    %c0_92 = arith.constant 0 : index
    %287 = vector.load %arg8[%c0_91, %c0_92] : memref<16x512xf32, #tpu.memory_space<vmem>>, vector<16x512xf32>
    tpu.vector_store %arg8[%c0_91, %c0_92], %286 {strides = array<i32>} : memref<16x512xf32, #tpu.memory_space<vmem>>, vector<16x512xf32>,
    return
  }
}

</mosaic_0001>

<bundles_post_ra>
// kernel: clip_adapter_graph_forward.1
= control target key start
LH: loop header
LB: loop body
LE: loop exit
PB: predicated region body
PF: predicated region fallthrough
CT: control target
= control target key end

     0   :  { %15 = vsyncpa [#allocation4], 0  ;;  %s3653_s0 = inlined_call_operand.<no memory space> [shape: f32[1], index: 0, kind: input, shape index: {}]   ;;  %s3654_s1 = inlined_call_operand.vmem [shape: f32[16,512], index: 1, kind: input, shape index: {}]   ;;  %s3655_s2 = inlined_call_operand.vmem [shape: bf16[512,64], index: 2, kind: input, shape index: {}]   ;;  %s3656_s3 = inlined_call_operand.vmem [shape: bf16[64,512], index: 3, kind: input, shape index: {}]   ;;  %s3657_s4 = inlined_call_operand.hbm [shape: bf16[512,256], index: 4, kind: input, shape index: {}]   ;;  %s3658_s5 = inlined_call_operand.hbm [shape: bf16[256,512], index: 5, kind: input, shape index: {}]   ;;  %s3659_s6 = inlined_call_operand.vmem [shape: f32[8,512], index: 6, kind: input, shape index: {}]   ;;  %s3660_s7 = inlined_call_operand.hbm [shape: f32[16,512], index: 7, kind: output, shape index: {0}]   ;;  %s3661_s8 = inlined_call_operand.hbm [shape: f32[16,512], index: 8, kind: output, shape index: {1}]  }
   0x1   :  { %16 = vsyncpa [#allocation7], 0 }
   0x2   :  { %17 = vsyncpa [#allocation5], 0 }
   0x3   :  { %18 = vsyncpa [#allocation10], 0  ;;  %s3123_s27 = smov [#allocation3]  }
   0x4   :  { %s32_s28 = sshll.u32 %s3123_s27, 4  ;;  %s33_s28 = int_to_ptr.vmem [resolvable:$true] %s32_s28 }
   0x5   :  { %s3043_s29 = scalar_lea.vmem %s33_s28, 8192  ;;  %p3048_p1 = scmp.lt.s32.totalorder %s33_s28, %s33_s28 }
   0x6   :  { %p3044_p0 = scmp.ne.s32.totalorder %s33_s28, %s3043_s29  ;;  %p3049_p2 = scmp.lt.s32.totalorder %s3043_s29, %s3043_s29 }
   0x8   :  { %p3050_p3 = por %p3049_p2, %p3048_p1 }
   0xa   :  { %p3051_p4 = pnand %p3050_p3, %p3044_p0 }
   0xc   :  { %3054 = shalt.err (!%p3051_p4)
}
   0xd   :  { %s3124_s30 = smov 128   ;;  %s3125_s9 = smov 8  }
   0xe   :  { %38 = dma.hbm_to_vmem [thread:$0]  %s3657_s4, 8192, %s33_s28, [#allocation4], %s3124_s30, %s3124_s30, %s3125_s9  }
   0xf   :  { %s3126_s12 = smov [#allocation6]  }
  0x10   :  { %s44_s13 = sshll.u32 %s3126_s12, 4  ;;  %s45_s13 = int_to_ptr.vmem [resolvable:$true] %s44_s13 }
  0x11   :  { %s3063_s14 = scalar_lea.vmem %s45_s13, 8192  ;;  %p3068_p6 = scmp.lt.s32.totalorder %s45_s13, %s45_s13 }
  0x12   :  { %p3064_p5 = scmp.ne.s32.totalorder %s45_s13, %s3063_s14  ;;  %p3069_p7 = scmp.lt.s32.totalorder %s3063_s14, %s3063_s14 }
  0x14   :  { %p3070_p8 = por %p3069_p7, %p3068_p6 }
  0x16   :  { %p3071_p9 = pnand %p3070_p8, %p3064_p5 }
  0x18   :  { %3074 = shalt.err (!%p3071_p9)
}
  0x19   :  { %s3127_s15 = smov 256   ;;  %s3128_s16 = smov 16  }
  0x1a   :  { %50 = dma.hbm_to_vmem [thread:$0]  %s3658_s5, 8192, %s45_s13, [#allocation7], %s3127_s15, %s3127_s15, %s3128_s16  }
  0x1b   :  { %3115 = dma.done.wait [#allocation4], 8192  }
  0x1c   :  { %3116 = vsyncadd [#allocation4], 4294959104 }
  0x1d   :  { %3117 = dma.done.wait [#allocation7], 8192  }
  0x1e   :  { %3118 = vsyncadd [#allocation7], 4294959104  ;;  %v2763_v0 = vld [vmem:[%s3655_s2 + $0x78] sm:$0xff]   ;;  %v2767_v4 = vld [vmem:[%s3655_s2 + $0x70] sm:$0xff]   ;;  %v3129_v60 = vmov 0   ;;  %vm533_vm0 = vcmask 523264  }
  0x1f   :  { %v2764_v1 = vld [vmem:[%s3655_s2 + $0xf8] sm:$0xff]   ;;  %2707 = vmatprep.subr.bf16.mxu0 %v2763_v0  ;;  %v2768_v5 = vld [vmem:[%s3655_s2 + $0xf0] sm:$0xff]   ;;  %v2771_v8 = vld [vmem:[%s3655_s2 + $0x68] sm:$0xff]   ;;  %vm841_vm3 = vcmask 130048  }
  0x20   :  { %v2765_v2 = vld [vmem:[%s3655_s2 + $0x38] sm:$0xff]   ;;  %2729 = vmatprep.subr.bf16.mxu1 %v2764_v1  ;;  %v2769_v6 = vld [vmem:[%s3655_s2 + $0x30] sm:$0xff]   ;;  %v2772_v9 = vld [vmem:[%s3655_s2 + $0xe8] sm:$0xff]  }
  0x21   :  { %v2766_v3 = vld [vmem:[%s3655_s2 + $0xb8] sm:$0xff]   ;;  %2708 = vmatpush3.bf16.msra.mxu0 %v2765_v2  ;;  %v2770_v7 = vld [vmem:[%s3655_s2 + $0xb0] sm:$0xff]   ;;  %v2773_v10 = vld [vmem:[%s3655_s2 + $0x28] sm:$0xff]  }
  0x22   :  { %2730 = vmatpush3.bf16.msra.mxu1 %v2766_v3  ;;  %2709 = vmatprep.subr.bf16.mxu0 %v2767_v4  ;;  %v2774_v11 = vld [vmem:[%s3655_s2 + $0xa8] sm:$0xff]   ;;  %v2775_v12 = vld [vmem:[%s3655_s2 + $0x60] sm:$0xff]   ;;  %v2779_v16 = vld [vmem:[%s3655_s2 + $0x58] sm:$0xff]  }
  0x23   :  { %2731 = vmatprep.subr.bf16.mxu1 %v2768_v5  ;;  %v2776_v13 = vld [vmem:[%s3655_s2 + $0xe0] sm:$0xff]   ;;  %v2780_v17 = vld [vmem:[%s3655_s2 + $0xd8] sm:$0xff]   ;;  %v2783_v20 = vld [vmem:[%s3655_s2 + $0x50] sm:$0xff]  }
  0x24   :  { %v2777_v14 = vld [vmem:[%s3655_s2 + $0x20] sm:$0xff]   ;;  %v2781_v18 = vld [vmem:[%s3655_s2 + $0x18] sm:$0xff]   ;;  %v2784_v21 = vld [vmem:[%s3655_s2 + $0xd0] sm:$0xff]  }
  0x25   :  { %2710 = vmatpush3.bf16.msra.mxu0 %v2769_v6  ;;  %v2778_v15 = vld [vmem:[%s3655_s2 + $0xa0] sm:$0xff]   ;;  %v2782_v19 = vld [vmem:[%s3655_s2 + $0x98] sm:$0xff]   ;;  %v2785_v22 = vld [vmem:[%s3655_s2 + $0x10] sm:$0xff]  }
  0x26   :  { %2732 = vmatpush3.bf16.msra.mxu1 %v2770_v7  ;;  %2711 = vmatprep.subr.bf16.mxu0 %v2771_v8  ;;  %v2786_v23 = vld [vmem:[%s3655_s2 + $0x90] sm:$0xff]   ;;  %v2787_v24 = vld [vmem:[%s3655_s2 + $0x48] sm:$0xff]   ;;  %v2791_v28 = vld [vmem:[%s3655_s2 + $0x40] sm:$0xff]  }
  0x27   :  { %2733 = vmatprep.subr.bf16.mxu1 %v2772_v9  ;;  %v2788_v25 = vld [vmem:[%s3655_s2 + $0xc8] sm:$0xff]   ;;  %v2792_v29 = vld [vmem:[%s3655_s2 + $0xc0] sm:$0xff]   ;;  %v3295_v34 = vld [vmem:[%s3654_s1 + $0x18] sm:$0xff] }
  0x28   :  { %v2789_v26 = vld [vmem:[%s3655_s2 + $0x8] sm:$0xff]   ;;  %v2793_v30 = vld [vmem:[%s3655_s2] sm:$0xff]   ;;  %v3302_v36 = vld [vmem:[%s3654_s1 + $0x38] sm:$0xff] }
  0x29   :  { %2712 = vmatpush3.bf16.msra.mxu0 %v2773_v10  ;;  %v2790_v27 = vld [vmem:[%s3655_s2 + $0x88] sm:$0xff]   ;;  %v2794_v31 = vld [vmem:[%s3655_s2 + $0x80] sm:$0xff]   ;;  %v74_v39 = vpack.c.bf16 %v3302_v36, %v3295_v34  ;;  %v3321_v41 = vld [vmem:[%s3654_s1 + $0x10] sm:$0xff] }
  0x2a   :  { %2734 = vmatpush3.bf16.msra.mxu1 %v2774_v11  ;;  %2713 = vmatprep.subr.bf16.mxu0 %v2775_v12  ;;  %v3285_v32 = vld [vmem:[%s3654_s1 + $0x8] sm:$0xff]  ;;  %v3307_v37 = vld [vmem:[%s3654_s1] sm:$0xff]  ;;  %v3326_v42 = vld [vmem:[%s3654_s1 + $0x30] sm:$0xff] }
  0x2b   :  { %2735 = vmatprep.subr.bf16.mxu1 %v2776_v13  ;;  %v3290_v33 = vld [vmem:[%s3654_s1 + $0x28] sm:$0xff]  ;;  %v3312_v38 = vld [vmem:[%s3654_s1 + $0x20] sm:$0xff]  ;;  %v73_v43 = vpack.c.bf16 %v3326_v42, %v3321_v41  ;;  %404 = vmatprep.mubr.bf16.mxu1 %v74_v39 }
  0x2c   :  { %v72_v35 = vpack.c.bf16 %v3290_v33, %v3285_v32  ;;  %v71_v40 = vpack.c.bf16 %v3312_v38, %v3307_v37  ;;  %v2797_v44 = vld [vmem:[%s3656_s3 + $0x64] ss:$16 sps:$4 sm:$0xff]   ;;  %v2800_v45 = vld [vmem:[%s3656_s3 + $0x6c] ss:$16 sps:$4 sm:$0xff]   ;;  %v2795_v46 = vld [vmem:[%s3656_s3 + $0x60] ss:$16 sps:$4 sm:$0xff]  }
  0x2d   :  { %2714 = vmatpush3.bf16.msra.mxu0 %v2777_v14  ;;  %v2798_v47 = vld [vmem:[%s3656_s3 + $0x68] ss:$16 sps:$4 sm:$0xff]   ;;  %v2803_v48 = vld [vmem:[%s3656_s3 + $0x44] ss:$16 sps:$4 sm:$0xff]   ;;  %v2806_v49 = vld [vmem:[%s3656_s3 + $0x4c] ss:$16 sps:$4 sm:$0xff]  }
  0x2e   :  { %2736 = vmatpush3.bf16.msra.mxu1 %v2778_v15  ;;  %2715 = vmatprep.subr.bf16.mxu0 %v2779_v16  ;;  %v2801_v50 = vld [vmem:[%s3656_s3 + $0x40] ss:$16 sps:$4 sm:$0xff]   ;;  %v2804_v51 = vld [vmem:[%s3656_s3 + $0x48] ss:$16 sps:$4 sm:$0xff]   ;;  %v2809_v52 = vld [vmem:[%s3656_s3 + $0x24] ss:$16 sps:$4 sm:$0xff]  }
  0x2f   :  { %2737 = vmatprep.subr.bf16.mxu1 %v2780_v17  ;;  %363 = vmatprep.mubr.bf16.mxu0 %v72_v35  ;;  %v2812_v53 = vld [vmem:[%s3656_s3 + $0x2c] ss:$16 sps:$4 sm:$0xff]   ;;  %v2807_v54 = vld [vmem:[%s3656_s3 + $0x20] ss:$16 sps:$4 sm:$0xff]   ;;  %v2810_v55 = vld [vmem:[%s3656_s3 + $0x28] ss:$16 sps:$4 sm:$0xff]   ;;  %v433_v17 = vlaneseq }
  0x30   :  { %v2815_v56 = vld [vmem:[%s3656_s3 + $0x4] ss:$16 sps:$4 sm:$0xff]   ;;  %v2818_v57 = vld [vmem:[%s3656_s3 + $0xc] ss:$16 sps:$4 sm:$0xff]   ;;  %v2813_v58 = vld [vmem:[%s3656_s3] ss:$16 sps:$4 sm:$0xff]  }
  0x31   :  { %2716 = vmatpush3.bf16.msra.mxu0 %v2781_v18  ;;  %v2816_v59 = vld [vmem:[%s3656_s3 + $0x8] ss:$16 sps:$4 sm:$0xff]   ;;  %v68_v63 = vld [vmem:[%s3659_s6] ss:$0 sm:$0xff]  ;;  %v3382_v18 = vshrl.u32 %v433_v17, 7 }
  0x32   :  { %2738 = vmatpush3.bf16.msra.mxu1 %v2782_v19  ;;  %2717 = vmatprep.subr.bf16.mxu0 %v2783_v20  ;;  %v2518_v20 = vld [vmem:[%s3659_s6 + $0x1] ss:$8 sm:$0xf] }
  0x33   :  { %2739 = vmatprep.subr.bf16.mxu1 %v2784_v21  ;;  %v3385_v19 = vsub.s32 0, %v3382_v18  ;;  %v3391_v21 = vsub.s32 2, %v3382_v18 }
  0x35   :  { %2718 = vmatpush3.bf16.msra.mxu0 %v2785_v22  ;;  %v3394_v22 = vsub.s32 1, %v3382_v18 }
  0x36   :  { %2740 = vmatpush3.bf16.msra.mxu1 %v2786_v23  ;;  %2719 = vmatprep.subr.bf16.mxu0 %v2787_v24  ;;  %v436_v23 = vrot.slane %v2518_v20, %v3385_v19  ;;  %v444_v24 = vrot.slane %v2518_v20, %v3391_v21 }
  0x37   :  { %2741 = vmatprep.subr.bf16.mxu1 %v2788_v25  ;;  %v440_v25 = vrot.slane %v2518_v20, %v3394_v22 }
  0x39   :  { %2720 = vmatpush3.bf16.msra.mxu0 %v2789_v26 }
  0x3a   :  { %2742 = vmatpush3.bf16.msra.mxu1 %v2790_v27  ;;  %2721 = vmatprep.subr.bf16.mxu0 %v2791_v28  ;;  %v3400_v28 = vsub.s32 3, %v3382_v18 }
  0x3b   :  { %2743 = vmatprep.subr.bf16.mxu1 %v2792_v29 }
  0x3d   :  { %2722 = vmatpush3.bf16.msra.mxu0 %v2793_v30  ;;  %v624_v30 = vstv %s3653_s0 }
  0x3e   :  { %2744 = vmatpush3.bf16.msra.mxu1 %v2794_v31  ;;  %545 = vmatprep.subr.bf16.mxu0 %v2797_v44 }
  0x3f   :  { %588 = vmatprep.subr.bf16.mxu1 %v2800_v45 }
  0x40   :  { %364 = vmatmul.mubr.bf16.vlgmr.msra.gmra.mxu0 %v71_v40 }
  0x41   :  { %405 = vmatmul.mubr.bf16.vlgmr.msra.gmra.mxu1 %v73_v43  ;;  %546 = vmatpush1.bf16.msra.mxu0 %v2795_v46  ;;  %v448_v43 = vrot.slane %v2518_v20, %v3400_v28 }
  0x42   :  { %589 = vmatpush1.bf16.msra.mxu1 %v2798_v47  ;;  %547 = vmatprep.subr.bf16.mxu0 %v2803_v48 }
  0x43   :  { %590 = vmatprep.subr.bf16.mxu1 %v2806_v49  ;;  %569 = vmatprep.mubr.bf16.mxu0 %v3129_v60 }
  0x44   :  { %612 = vmatprep.mubr.bf16.mxu1 %v3129_v60 }
  0x45   :  { %548 = vmatpush1.bf16.msra.mxu0 %v2801_v50 }
  0x46   :  { %591 = vmatpush1.bf16.msra.mxu1 %v2804_v51  ;;  %549 = vmatprep.subr.bf16.mxu0 %v2809_v52 }
  0x47   :  { %592 = vmatprep.subr.bf16.mxu1 %v2812_v53 }
  0x49   :  { %550 = vmatpush1.bf16.msra.mxu0 %v2807_v54 }
  0x4a   :  { %593 = vmatpush1.bf16.msra.mxu1 %v2810_v55  ;;  %551 = vmatprep.subr.bf16.mxu0 %v2815_v56 }
  0x4b   :  { %594 = vmatprep.subr.bf16.mxu1 %v2818_v57 }
  0x4d   :  { %552 = vmatpush1.bf16.msra.mxu0 %v2813_v58 }
  0x4e   :  { %595 = vmatpush1.bf16.msra.mxu1 %v2816_v59 }
 0x100   :  { %v2723_v61 = vpop.f32.mrf.mxu0 }
 0x101   :  { %v2745_v62 = vpop.f32.mrf.mxu1 }
 0x102   :  { %v2724_v0 = vpop.f32.mrf.mxu0 }
 0x103   :  { %v2725_v1 = vadd.f32 %v2724_v0, %v2723_v61  ;;  %v2746_v2 = vpop.f32.mrf.mxu1 }
 0x104   :  { %v2726_v3 = vpop.f32.mrf.mxu0  ;;  %v2747_v7 = vadd.f32 %v2746_v2, %v2745_v62 }
 0x105   :  { %v366_v4 = vadd.f32 %v2725_v1, %v68_v63  ;;  %v2748_v5 = vpop.f32.mrf.mxu1 }
 0x106   :  { %v2727_v6 = vpop.f32.mrf.mxu0 }
 0x107   :  { %v2728_v8 = vadd.f32 %v2727_v6, %v2726_v3  ;;  %v2749_v9 = vpop.f32.mrf.mxu1  ;;  %v407_v10 = vadd.f32 %v2747_v7, %v366_v4 }
 0x108   :  { %v2750_v12 = vadd.f32 %v2749_v9, %v2748_v5 }
 0x109   :  { %v369_v11 = vadd.f32 %v2728_v8, %v68_v63  ;;  %v413_v14 = vmax.f32 %v407_v10, 0.0 }
 0x10b   :  { %v410_v13 = vadd.f32 %v2750_v12, %v369_v11 }
 0x10d   :  { %v414_v15 = vmax.f32 %v410_v13, 0.0 }
 0x10f   :  { %v415_v16 = vpack.c.bf16 %v414_v15, %v413_v14 }
 0x111   :  { %2567 = vmatmul.mubr.msk.bf16.vlgmr.msra.gmra.mxu0 %vm533_vm0, %v415_v16  ;;  %2568 = vmatmul.mubr.msk.bf16.vlgmr.msra.gmra.mxu1 %vm533_vm0, %v415_v16 }
 0x1d1   :  { %v571_v26 = vpop.f32.mrf.mxu0  ;;  %v614_v27 = vpop.f32.mrf.mxu1 }
 0x1d2   :  { %v572_v29 = vadd.f32 %v571_v26, %v436_v23  ;;  %v615_v39 = vadd.f32 %v614_v27, %v444_v24 }
 0x1d3   :  { %v573_v31 = vpop.f32.mrf.mxu0  ;;  %v616_v35 = vpop.f32.mrf.mxu1 }
 0x1d4   :  { %v574_v40 = vadd.f32 %v573_v31, %v440_v25  ;;  %v625_v46 = vmul.f32 %v624_v30, %v572_v29  ;;  %v627_v52 = vmul.f32 %v624_v30, %v615_v39  ;;  %v617_v55 = vadd.f32 %v616_v35, %v448_v43  ;;  %v2821_v31 = vld [vmem:[#allocation3 + $0x74] ss:$8 sps:$4 sm:$0xff]  }
 0x1d5   :  { %v575_v44 = vpop.f32.mrf.mxu0  ;;  %v618_v45 = vpop.f32.mrf.mxu1  ;;  %v2824_v35 = vld [vmem:[#allocation3 + $0x174] ss:$8 sps:$4 sm:$0xff]  }
 0x1d6   :  { %v626_v47 = vmul.f32 %v624_v30, %v574_v40  ;;  %v576_v48 = vadd.f32 %v575_v44, %v436_v23  ;;  %v619_v49 = vadd.f32 %v618_v45, %v444_v24  ;;  %v633_v59 = vadd.f32 %v625_v46, %v3307_v37  ;;  %v2822_v44 = vld [vmem:[#allocation3 + $0x170] ss:$8 sps:$4 sm:$0xff]   ;;  %v2827_v45 = vld [vmem:[#allocation3 + $0x64] ss:$8 sps:$4 sm:$0xff]  }
 0x1d7   :  { %v577_v50 = vpop.f32.mrf.mxu0  ;;  %v620_v51 = vpop.f32.mrf.mxu1  ;;  %v635_v2 = vadd.f32 %v627_v52, %v3321_v41  ;;  %v628_v3 = vmul.f32 %v624_v30, %v617_v55  ;;  %v2830_v46 = vld [vmem:[#allocation3 + $0x164] ss:$8 sps:$4 sm:$0xff]   ;;  %v2836_v52 = vld [vmem:[#allocation3 + $0x154] ss:$8 sps:$4 sm:$0xff]  }
 0x1d8   :  { %v634_v53 = vadd.f32 %v626_v47, %v3285_v32  ;;  %v578_v54 = vadd.f32 %v577_v50, %v440_v25  ;;  %v629_v56 = vmul.f32 %v624_v30, %v576_v48  ;;  %v631_v57 = vmul.f32 %v624_v30, %v619_v49  ;;  %v2825_v47 = vld [vmem:[#allocation3 + $0x60] ss:$8 sps:$4 sm:$0xff]   ;;  %v2839_v55 = vld [vmem:[#allocation3 + $0x44] ss:$8 sps:$4 sm:$0xff]  }
 0x1d9   :  { %v621_v58 = vadd.f32 %v620_v51, %v448_v43  ;;  %v641_v32 = vmul.f32 %v633_v59, %v633_v59  ;;  %v636_v9 = vadd.f32 %v628_v3, %v3295_v34  ;;  %v643_v11 = vmul.f32 %v635_v2, %v635_v2  ;;  %v2819_v43 = vld [vmem:[#allocation3 + $0x70] ss:$8 sps:$4 sm:$0xff]   ;;  %v2828_v48 = vld [vmem:[#allocation3 + $0x160] ss:$8 sps:$4 sm:$0xff]   ;;  %v2833_v51 = vld [vmem:[#allocation3 + $0x54] ss:$8 sps:$4 sm:$0xff]  }
 0x1da   :  { %v630_v60 = vmul.f32 %v624_v30, %v578_v54  ;;  %v637_v61 = vadd.f32 %v629_v56, %v3312_v38  ;;  %v642_v63 = vmul.f32 %v634_v53, %v634_v53  ;;  %v639_v0 = vadd.f32 %v631_v57, %v3326_v42  ;;  %v2834_v54 = vld [vmem:[#allocation3 + $0x150] ss:$8 sps:$4 sm:$0xff]   ;;  %v2842_v56 = vld [vmem:[#allocation3 + $0x144] ss:$8 sps:$4 sm:$0xff]   ;;  %v2837_v57 = vld [vmem:[#allocation3 + $0x40] ss:$8 sps:$4 sm:$0xff]  }
 0x1db   :  { %v632_v62 = vmul.f32 %v624_v30, %v621_v58  ;;  %v2840_v58 = vld [vmem:[#allocation3 + $0x140] ss:$8 sps:$4 sm:$0xff]   ;;  %v2857_v3 = vld [vmem:[#allocation3 + $0x14] ss:$8 sps:$4 sm:$0xff]  }
 0x1dc   :  { %v638_v1 = vadd.f32 %v630_v60, %v3290_v33  ;;  %v645_v5 = vmul.f32 %v637_v61, %v637_v61  ;;  %v647_v7 = vmul.f32 %v639_v0, %v639_v0  ;;  %v649_v37 = vadd.f32 %v642_v63, %v641_v32  ;;  %v2848_v60 = vld [vmem:[#allocation3 + $0x134] ss:$8 sps:$4 sm:$0xff]   ;;  %v2851_v63 = vld [vmem:[#allocation3 + $0x24] ss:$8 sps:$4 sm:$0xff]  }
 0x1dd   :  { %v640_v4 = vadd.f32 %v632_v62, %v3302_v36  ;;  %v644_v33 = vmul.f32 %v636_v9, %v636_v9  ;;  %v2846_v62 = vld [vmem:[#allocation3 + $0x130] ss:$8 sps:$4 sm:$0xff]   ;;  %v2860_v32 = vld [vmem:[#allocation3 + $0x114] ss:$8 sps:$4 sm:$0xff]  }
 0x1de   :  { %v646_v6 = vmul.f32 %v638_v1, %v638_v1  ;;  %v650_v42 = vadd.f32 %v649_v37, %v643_v11  ;;  %v2864_v37 = vld [vmem:[#allocation3 + $0x100] ss:$8 sps:$4 sm:$0xff]   ;;  %v2870_v11 = vld [vmem:[#allocation3 + $0x1f0] ss:$8 sps:$4 sm:$0xff]  }
 0x1df   :  { %v648_v38 = vmul.f32 %v640_v4, %v640_v4 }
 0x1e0   :  { %v654_v8 = vadd.f32 %v646_v6, %v645_v5  ;;  %v651_v13 = vadd.f32 %v650_v42, %v644_v33  ;;  %v2858_v5 = vld [vmem:[#allocation3 + $0x110] ss:$8 sps:$4 sm:$0xff]   ;;  %v2863_v6 = vld [vmem:[#allocation3 + $0x4] ss:$8 sps:$4 sm:$0xff]   ;;  %v2873_v33 = vld [vmem:[#allocation3 + $0xe0] ss:$8 sps:$4 sm:$0xff]  }
 0x1e1   :  { %v2878_v42 = vld [vmem:[#allocation3 + $0x1e4] ss:$8 sps:$4 sm:$0xff]  }
 0x1e2   :  { %v655_v10 = vadd.f32 %v654_v8, %v647_v7  ;;  %v2866_v7 = vld [vmem:[#allocation3 + $0x104] ss:$8 sps:$4 sm:$0xff]   ;;  %v2861_v8 = vld [vmem:[#allocation3] ss:$8 sps:$4 sm:$0xff]  }
 0x1e4   :  { %v656_v12 = vadd.f32 %v655_v10, %v648_v38  ;;  %v2872_v38 = vld [vmem:[#allocation3 + $0x1f4] ss:$8 sps:$4 sm:$0xff]   ;;  %v2867_v10 = vld [vmem:[#allocation3 + $0xf0] ss:$8 sps:$4 sm:$0xff]  }
 0x1e6   :  { %657 = vadd.xlane.f32.xlu0 %v656_v12  ;;  %v2875_v12 = vld [vmem:[#allocation3 + $0xe4] ss:$8 sps:$4 sm:$0xff]  }
 0x1ea   :  { %652 = vadd.xlane.f32.xlu0 %v651_v13  ;;  %v2876_v13 = vld [vmem:[#allocation3 + $0x1e0] ss:$8 sps:$4 sm:$0xff]  }
 0x26f   :  { %v658_v41 = vpop.xlane.xlu0 %657 }
 0x270   :  { %v660_v14 = vmax.f32 %v658_v41, 1e-24  ;;  %v2881_v41 = vld [vmem:[#allocation3 + $0xd4] ss:$8 sps:$4 sm:$0xff]  }
 0x272   :  { %3011 = vrsqrt.f32 %v660_v14  ;;  %v2884_v14 = vld [vmem:[#allocation3 + $0x1d4] ss:$8 sps:$4 sm:$0xff]  }
 0x273   :  { %v653_v36 = vpop.xlane.xlu0 %652 }
 0x274   :  { %v659_v15 = vmax.f32 %v653_v36, 1e-24  ;;  %v2879_v36 = vld [vmem:[#allocation3 + $0xd0] ss:$8 sps:$4 sm:$0xff]  }
 0x276   :  { %3013 = vrsqrt.f32 %v659_v15  ;;  %v2882_v15 = vld [vmem:[#allocation3 + $0x1d0] ss:$8 sps:$4 sm:$0xff]  }
 0x27f   :  { %v3012_v16 = vpop.eup %3011 }
 0x280   :  { %v668_v20 = vmul.f32 %v3012_v16, %v638_v1  ;;  %v670_v23 = vmul.f32 %v3012_v16, %v640_v4  ;;  %v3414_v24 = vmul.f32 %v3012_v16, %v637_v61  ;;  %v3416_v34 = vmul.f32 %v3012_v16, %v639_v0  ;;  %v2843_v61 = vld [vmem:[#allocation3 + $0x30] ss:$8 sps:$4 sm:$0xff]   ;;  %v2854_v0 = vld [vmem:[#allocation3 + $0x124] ss:$8 sps:$4 sm:$0xff]   ;;  %v2849_v1 = vld [vmem:[#allocation3 + $0x20] ss:$8 sps:$4 sm:$0xff]  }
 0x281   :  { %v2855_v4 = vld [vmem:[#allocation3 + $0x10] ss:$8 sps:$4 sm:$0xff]   ;;  %v2887_v16 = vld [vmem:[#allocation3 + $0xc4] ss:$8 sps:$4 sm:$0xff]  }
 0x282   :  { %676 = vst [vmem:[#allocation8 + $0x28] sm:$0xff] %v668_v20  ;;  %707 = vmatprep.subr.mxu0 %v668_v20  ;;  %678 = vst [vmem:[#allocation8 + $0x38] sm:$0xff] %v670_v23  ;;  %782 = vmatprep.subr.mxu1 %v670_v23 }
 0x283   :  { %675 = vst [vmem:[#allocation8 + $0x20] sm:$0xff] %v3414_v24  ;;  %677 = vst [vmem:[#allocation8 + $0x30] sm:$0xff] %v3416_v34  ;;  %v3014_v25 = vpop.eup %3013  ;;  %708 = vmatpush1.xpose.msra.mxu0 %v3414_v24  ;;  %783 = vmatpush1.xpose.msra.mxu1 %v3416_v34 }
 0x284   :  { %v664_v26 = vmul.f32 %v3014_v25, %v634_v53  ;;  %v666_v27 = vmul.f32 %v3014_v25, %v636_v9  ;;  %v3422_v29 = vmul.f32 %v3014_v25, %v633_v59  ;;  %v3424_v30 = vmul.f32 %v3014_v25, %v635_v2  ;;  %v2831_v53 = vld [vmem:[#allocation3 + $0x50] ss:$8 sps:$4 sm:$0xff]   ;;  %v2845_v59 = vld [vmem:[#allocation3 + $0x34] ss:$8 sps:$4 sm:$0xff]   ;;  %v2852_v2 = vld [vmem:[#allocation3 + $0x120] ss:$8 sps:$4 sm:$0xff]  }
 0x285   :  { %v2869_v9 = vld [vmem:[#allocation3 + $0xf4] ss:$8 sps:$4 sm:$0xff]   ;;  %v2888_v25 = vld [vmem:[#allocation3 + $0x1c0] ss:$8 sps:$4 sm:$0xff]  }
 0x286   :  { %672 = vst [vmem:[#allocation8 + $0x8] sm:$0xff] %v664_v26  ;;  %709 = vmatprep.subr.mxu0 %v664_v26  ;;  %743 = vmatprep.mubr.f32.mxu0 %v664_v26  ;;  %674 = vst [vmem:[#allocation8 + $0x18] sm:$0xff] %v666_v27  ;;  %v1078_v39 = vpack.c.bf16 %v3414_v24, %v3422_v29  ;;  %v1080_v40 = vpack.c.bf16 %v3416_v34, %v3424_v30 }
 0x287   :  { %671 = vst [vmem:[#allocation8] sm:$0xff] %v3422_v29  ;;  %673 = vst [vmem:[#allocation8 + $0x10] sm:$0xff] %v3424_v30  ;;  %784 = vmatprep.subr.mxu1 %v666_v27  ;;  %818 = vmatprep.mubr.f32.mxu1 %v666_v27  ;;  %v1079_v49 = vpack.c.bf16 %v668_v20, %v664_v26  ;;  %v1081_v50 = vpack.c.bf16 %v670_v23, %v666_v27  ;;  %v2893_v26 = vld [vmem:[#allocation3 + $0xb4] ss:$8 sps:$4 sm:$0xff]  }
 0x288   :  { %710 = vmatpush1.xpose.msra.mxu0 %v3422_v29  ;;  %785 = vmatpush1.xpose.msra.mxu1 %v3424_v30  ;;  %v2896_v27 = vld [vmem:[#allocation3 + $0x1b4] ss:$8 sps:$4 sm:$0xff]  }
 0x289   :  { %1466 = vmatprep.subr.bf16.mxu0 %v2821_v31  ;;  %1509 = vmatprep.subr.bf16.mxu1 %v2824_v35  ;;  %v2891_v31 = vld [vmem:[#allocation3 + $0xb0] ss:$8 sps:$4 sm:$0xff]  }
 0x28a   :  { %v2894_v35 = vld [vmem:[#allocation3 + $0x1b0] ss:$8 sps:$4 sm:$0xff]  }
 0x28b   :  { %744 = vmatmul.mubr.f32.vlgmr.msra.gmra.mxu0 %v3422_v29  ;;  %819 = vmatmul.mubr.f32.vlgmr.msra.gmra.mxu1 %v3424_v30 }
 0x28c   :  { %748 = vmatprep.mubr.f32.mxu0 %v668_v20  ;;  %823 = vmatprep.mubr.f32.mxu1 %v670_v23  ;;  %v2890_v20 = vld [vmem:[#allocation3 + $0x1c4] ss:$8 sps:$4 sm:$0xff]   ;;  %v2885_v23 = vld [vmem:[#allocation3 + $0xc0] ss:$8 sps:$4 sm:$0xff]  }
 0x28d   :  { %1467 = vmatpush1.bf16.msra.mxu0 %v2819_v43  ;;  %1510 = vmatpush1.bf16.msra.mxu1 %v2822_v44  ;;  %v2899_v43 = vld [vmem:[#allocation3 + $0xa4] ss:$8 sps:$4 sm:$0xff]  }
 0x28e   :  { %1468 = vmatprep.subr.bf16.mxu0 %v2827_v45  ;;  %1511 = vmatprep.subr.bf16.mxu1 %v2830_v46  ;;  %v2902_v44 = vld [vmem:[#allocation3 + $0x1a4] ss:$8 sps:$4 sm:$0xff]   ;;  %v2897_v45 = vld [vmem:[#allocation3 + $0xa0] ss:$8 sps:$4 sm:$0xff]  }
 0x28f   :  { %749 = vmatmul.mubr.f32.gmra.mxu0 %v3414_v24  ;;  %824 = vmatmul.mubr.f32.gmra.mxu1 %v3416_v34  ;;  %v2900_v46 = vld [vmem:[#allocation3 + $0x1a0] ss:$8 sps:$4 sm:$0xff]  }
 0x290   :  { %1498 = vmatprep.mubr.bf16.mxu0 %v1079_v49  ;;  %1541 = vmatprep.mubr.bf16.mxu1 %v1081_v50  ;;  %v2903_v49 = vld [vmem:[#allocation3 + $0x90] ss:$8 sps:$4 sm:$0xff]  }
 0x291   :  { %1469 = vmatpush1.bf16.msra.mxu0 %v2825_v47  ;;  %1512 = vmatpush1.bf16.msra.mxu1 %v2828_v48  ;;  %v2905_v47 = vld [vmem:[#allocation3 + $0x94] ss:$8 sps:$4 sm:$0xff]   ;;  %v2906_v50 = vld [vmem:[#allocation3 + $0x190] ss:$8 sps:$4 sm:$0xff]  }
 0x292   :  { %1470 = vmatprep.subr.bf16.mxu0 %v2833_v51  ;;  %1513 = vmatprep.subr.bf16.mxu1 %v2836_v52  ;;  %v2908_v48 = vld [vmem:[#allocation3 + $0x194] ss:$8 sps:$4 sm:$0xff]   ;;  %v2911_v51 = vld [vmem:[#allocation3 + $0x84] ss:$8 sps:$4 sm:$0xff]  }
 0x293   :  { %v2914_v52 = vld [vmem:[#allocation3 + $0x184] ss:$8 sps:$4 sm:$0xff]  }
 0x295   :  { %1471 = vmatpush1.bf16.msra.mxu0 %v2831_v53  ;;  %1514 = vmatpush1.bf16.msra.mxu1 %v2834_v54  ;;  %v2909_v53 = vld [vmem:[#allocation3 + $0x80] ss:$8 sps:$4 sm:$0xff]  }
 0x296   :  { %1472 = vmatprep.subr.bf16.mxu0 %v2839_v55  ;;  %1515 = vmatprep.subr.bf16.mxu1 %v2842_v56  ;;  %v2912_v54 = vld [vmem:[#allocation3 + $0x180] ss:$8 sps:$4 sm:$0xff]   ;;  %v3130_v55 = vmov 0.0  }
 0x299   :  { %1473 = vmatpush1.bf16.msra.mxu0 %v2837_v57  ;;  %1516 = vmatpush1.bf16.msra.mxu1 %v2840_v58  ;;  %v831_v58 = vadd.s32 8, %v3382_v18 }
 0x29a   :  { %1474 = vmatprep.subr.bf16.mxu0 %v2845_v59  ;;  %1517 = vmatprep.subr.bf16.mxu1 %v2848_v60  ;;  %v833_v59 = vand.u32 127, %v433_v17 }
 0x29c   :  { %vm835_vm1 = vcmp.eq.s32.totalorder %v831_v58, %v833_v59  ;;  %vm834_vm2 = vcmp.eq.s32.totalorder %v3382_v18, %v833_v59 }
 0x29d   :  { %1475 = vmatpush1.bf16.msra.mxu0 %v2843_v61  ;;  %1518 = vmatpush1.bf16.msra.mxu1 %v2846_v62 }
 0x29e   :  { %1476 = vmatprep.subr.bf16.mxu0 %v2851_v63  ;;  %1519 = vmatprep.subr.bf16.mxu1 %v2854_v0 }
 0x2a1   :  { %1477 = vmatpush1.bf16.msra.mxu0 %v2849_v1  ;;  %1520 = vmatpush1.bf16.msra.mxu1 %v2852_v2  ;;  %v3454_v1 = vcvt.s32.f32 %v833_v59 }
 0x2a2   :  { %1478 = vmatprep.subr.bf16.mxu0 %v2857_v3  ;;  %1521 = vmatprep.subr.bf16.mxu1 %v2860_v32 }
 0x2a5   :  { %1479 = vmatpush1.bf16.msra.mxu0 %v2855_v4  ;;  %1522 = vmatpush1.bf16.msra.mxu1 %v2858_v5 }
 0x2a6   :  { %1480 = vmatprep.subr.bf16.mxu0 %v2863_v6  ;;  %1523 = vmatprep.subr.bf16.mxu1 %v2866_v7 }
 0x2a9   :  { %1481 = vmatpush1.bf16.msra.mxu0 %v2861_v8  ;;  %1524 = vmatpush1.bf16.msra.mxu1 %v2864_v37 }
 0x2aa   :  { %1482 = vmatprep.subr.bf16.mxu0 %v2869_v9  ;;  %1525 = vmatprep.subr.bf16.mxu1 %v2872_v38 }
 0x2ad   :  { %1483 = vmatpush2.bf16.msra.mxu0 %v2867_v10  ;;  %1526 = vmatpush2.bf16.msra.mxu1 %v2870_v11 }
 0x2ae   :  { %1484 = vmatprep.subr.bf16.mxu0 %v2875_v12  ;;  %1527 = vmatprep.subr.bf16.mxu1 %v2878_v42 }
 0x2b1   :  { %1485 = vmatpush2.bf16.msra.mxu0 %v2873_v33  ;;  %1528 = vmatpush2.bf16.msra.mxu1 %v2876_v13 }
 0x2b2   :  { %1486 = vmatprep.subr.bf16.mxu0 %v2881_v41  ;;  %1529 = vmatprep.subr.bf16.mxu1 %v2884_v14  ;;  %v840_v14 = vsel %vm835_vm1, 1.0, %v3130_v55 }
 0x2b5   :  { %1487 = vmatpush2.bf16.msra.mxu0 %v2879_v36  ;;  %1530 = vmatpush2.bf16.msra.mxu1 %v2882_v15 }
 0x2b6   :  { %1488 = vmatprep.subr.bf16.mxu0 %v2887_v16  ;;  %1531 = vmatprep.subr.bf16.mxu1 %v2890_v20  ;;  %v839_v16 = vsel %vm834_vm2, 1.0, %v3130_v55 }
 0x2b9   :  { %1489 = vmatpush2.bf16.msra.mxu0 %v2885_v23  ;;  %1532 = vmatpush2.bf16.msra.mxu1 %v2888_v25 }
 0x2ba   :  { %1490 = vmatprep.subr.bf16.mxu0 %v2893_v26  ;;  %1533 = vmatprep.subr.bf16.mxu1 %v2896_v27 }
 0x2bd   :  { %1491 = vmatpush2.bf16.msra.mxu0 %v2891_v31  ;;  %1534 = vmatpush2.bf16.msra.mxu1 %v2894_v35 }
 0x2be   :  { %1492 = vmatprep.subr.bf16.mxu0 %v2899_v43  ;;  %1535 = vmatprep.subr.bf16.mxu1 %v2902_v44 }
 0x2c1   :  { %1493 = vmatpush2.bf16.msra.mxu0 %v2897_v45  ;;  %1536 = vmatpush2.bf16.msra.mxu1 %v2900_v46 }
 0x2c2   :  { %1494 = vmatprep.subr.bf16.mxu0 %v2905_v47  ;;  %1537 = vmatprep.subr.bf16.mxu1 %v2908_v48 }
 0x2c5   :  { %1495 = vmatpush2.bf16.msra.mxu0 %v2903_v49  ;;  %1538 = vmatpush2.bf16.msra.mxu1 %v2906_v50 }
 0x2c6   :  { %1496 = vmatprep.subr.bf16.mxu0 %v2911_v51  ;;  %1539 = vmatprep.subr.bf16.mxu1 %v2914_v52 }
 0x2c9   :  { %1497 = vmatpush2.bf16.msra.mxu0 %v2909_v53  ;;  %1540 = vmatpush2.bf16.msra.mxu1 %v2912_v54 }
 0x2cc   :  { %1499 = vmatmul.mubr.bf16.vlgmr.msra.gmra.mxu0 %v1078_v39  ;;  %1542 = vmatmul.mubr.bf16.vlgmr.msra.gmra.mxu1 %v1080_v40 }
 0x2cd   :  { %1626 = vmatprep.mubr.f32.mxu0 %v3130_v55  ;;  %1817 = vmatprep.mubr.f32.mxu1 %v3130_v55 }
 0x34b   :  { %v745_v56 = vpop.f32.mrf.mxu0  ;;  %v820_v57 = vpop.f32.mrf.mxu1 }
 0x34c   :  { %v821_v29 = vadd.f32 %v820_v57, %v745_v56 }
 0x34d   :  { %v747_v60 = vpop.f32.mrf.mxu0  ;;  %v822_v61 = vpop.f32.mrf.mxu1 }
 0x34e   :  { %v837_v0 = vsel %vm834_vm2, -3e+38, %v821_v29 }
 0x34f   :  { %v750_v62 = vpop.f32.mrf.mxu0  ;;  %v825_v24 = vpop.f32.mrf.mxu1  ;;  %v842_v17 = vsel %vm841_vm3, %v837_v0, -inf }
 0x350   :  { %v826_v39 = vadd.f32 %v825_v24, %v750_v62 }
 0x351   :  { %v752_v34 = vpop.f32.mrf.mxu0  ;;  %v827_v30 = vpop.f32.mrf.mxu1 }
 0x352   :  { %v838_v40 = vsel %vm835_vm1, -3e+38, %v826_v39 }
 0x353   :  { %v845_v63 = vsel %vm841_vm3, %v838_v40, -inf }
 0x354   :  { %846 = vmax.xlane.f32.xlu1 %v845_v63 }
 0x358   :  { %843 = vmax.xlane.f32.xlu1 %v842_v17 }
 0x3dd   :  { %v847_v2 = vpop.xlane.xlu1 %846 }
 0x3de   :  { %vm849_vm4 = vcmp.eq.f32.partialorder %v838_v40, %v847_v2 }
 0x3df   :  { %v851_v3 = vsel %vm849_vm4, %v3454_v1, 16.0 }
 0x3e0   :  { %v855_v32 = vsel %vm841_vm3, %v851_v3, inf }
 0x3e1   :  { %856 = vmin.xlane.f32.xlu0 %v855_v32  ;;  %v844_v4 = vpop.xlane.xlu1 %843 }
 0x3e2   :  { %vm848_vm5 = vcmp.eq.f32.partialorder %v837_v0, %v844_v4 }
 0x3e3   :  { %v850_v5 = vsel %vm848_vm5, %v3454_v1, 16.0 }
 0x3e4   :  { %v852_v6 = vsel %vm841_vm3, %v850_v5, inf }
 0x3e5   :  { %853 = vmin.xlane.f32.xlu1 %v852_v6 }
 0x46a   :  { %v857_v7 = vpop.xlane.xlu0 %856 }
 0x46b   :  { %vm859_vm6 = vcmp.eq.f32.partialorder %v3454_v1, %v857_v7 }
 0x46c   :  { %v863_v8 = vsel %vm859_vm6, -3e+38, %v838_v40  ;;  %v861_v15 = vsel %vm859_vm6, %v847_v2, %v840_v14 }
 0x46d   :  { %v867_v37 = vsel %vm841_vm3, %v863_v8, -inf }
 0x46e   :  { %868 = vmax.xlane.f32.xlu0 %v867_v37  ;;  %v854_v9 = vpop.xlane.xlu1 %853 }
 0x46f   :  { %vm858_vm7 = vcmp.eq.f32.partialorder %v3454_v1, %v854_v9 }
 0x470   :  { %v862_v38 = vsel %vm858_vm7, -3e+38, %v837_v0  ;;  %v860_v27 = vsel %vm858_vm7, %v844_v4, %v839_v16 }
 0x471   :  { %v864_v10 = vsel %vm841_vm3, %v862_v38, -inf }
 0x472   :  { %865 = vmax.xlane.f32.xlu1 %v864_v10 }
 0x4f7   :  { %v869_v11 = vpop.xlane.xlu0 %868 }
 0x4f8   :  { %vm871_vm8 = vcmp.eq.f32.partialorder %v863_v8, %v869_v11 }
 0x4f9   :  { %v873_v12 = vsel %vm871_vm8, %v3454_v1, 16.0 }
 0x4fa   :  { %v877_v42 = vsel %vm841_vm3, %v873_v12, inf }
 0x4fb   :  { %878 = vmin.xlane.f32.xlu0 %v877_v42  ;;  %v866_v33 = vpop.xlane.xlu1 %865 }
 0x4fc   :  { %vm870_vm9 = vcmp.eq.f32.partialorder %v862_v38, %v866_v33 }
 0x4fd   :  { %v872_v13 = vsel %vm870_vm9, %v3454_v1, 16.0 }
 0x4fe   :  { %v874_v41 = vsel %vm841_vm3, %v872_v13, inf }
 0x4ff   :  { %875 = vmin.xlane.f32.xlu1 %v874_v41 }
 0x584   :  { %v879_v36 = vpop.xlane.xlu0 %878 }
 0x585   :  { %vm881_vm10 = vcmp.eq.f32.partialorder %v3454_v1, %v879_v36 }
 0x586   :  { %v883_v20 = vsel %vm881_vm10, %v869_v11, %v861_v15  ;;  %v885_v23 = vsel %vm881_vm10, -3e+38, %v863_v8 }
 0x587   :  { %v889_v25 = vsel %vm841_vm3, %v885_v23, -inf }
 0x588   :  { %890 = vmax.xlane.f32.xlu0 %v889_v25  ;;  %v876_v26 = vpop.xlane.xlu1 %875 }
 0x589   :  { %vm880_vm11 = vcmp.eq.f32.partialorder %v3454_v1, %v876_v26 }
 0x58a   :  { %v882_v31 = vsel %vm880_vm11, %v866_v33, %v860_v27  ;;  %v884_v35 = vsel %vm880_vm11, -3e+38, %v862_v38 }
 0x58b   :  { %v886_v43 = vsel %vm841_vm3, %v884_v35, -inf }
 0x58c   :  { %887 = vmax.xlane.f32.xlu1 %v886_v43 }
 0x611   :  { %v891_v44 = vpop.xlane.xlu0 %890 }
 0x612   :  { %vm893_vm12 = vcmp.eq.f32.partialorder %v885_v23, %v891_v44 }
 0x613   :  { %v895_v18 = vsel %vm893_vm12, %v3454_v1, 16.0 }
 0x614   :  { %v899_v45 = vsel %vm841_vm3, %v895_v18, inf }
 0x615   :  { %900 = vmin.xlane.f32.xlu0 %v899_v45  ;;  %v888_v46 = vpop.xlane.xlu1 %887 }
 0x616   :  { %vm892_vm13 = vcmp.eq.f32.partialorder %v884_v35, %v888_v46 }
 0x617   :  { %v894_v47 = vsel %vm892_vm13, %v3454_v1, 16.0 }
 0x618   :  { %v896_v48 = vsel %vm841_vm3, %v894_v47, inf }
 0x619   :  { %897 = vmin.xlane.f32.xlu1 %v896_v48 }
 0x69e   :  { %v901_v49 = vpop.xlane.xlu0 %900 }
 0x69f   :  { %vm903_vm14 = vcmp.eq.f32.partialorder %v3454_v1, %v901_v49 }
 0x6a0   :  { %v905_v50 = vsel %vm903_vm14, %v891_v44, %v883_v20  ;;  %v907_v51 = vsel %vm903_vm14, -3e+38, %v885_v23 }
 0x6a1   :  { %v911_v52 = vsel %vm841_vm3, %v907_v51, -inf }
 0x6a2   :  { %912 = vmax.xlane.f32.xlu0 %v911_v52  ;;  %v898_v53 = vpop.xlane.xlu1 %897 }
 0x6a3   :  { %vm902_vm15 = vcmp.eq.f32.partialorder %v3454_v1, %v898_v53 }
 0x6a4   :  { %v904_v54 = vsel %vm902_vm15, %v888_v46, %v882_v31  ;;  %v906_v56 = vsel %vm902_vm15, -3e+38, %v884_v35 }
 0x6a5   :  { %v908_v57 = vsel %vm841_vm3, %v906_v56, -inf }
 0x6a6   :  { %909 = vmax.xlane.f32.xlu1 %v908_v57 }
 0x72b   :  { %v913_v58 = vpop.xlane.xlu0 %912 }
 0x72c   :  { %vm915_vm0 = vcmp.eq.f32.partialorder %v907_v51, %v913_v58 }
 0x72d   :  { %v917_v59 = vsel %vm915_vm0, %v3454_v1, 16.0 }
 0x72e   :  { %v921_v60 = vsel %vm841_vm3, %v917_v59, inf }
 0x72f   :  { %922 = vmin.xlane.f32.xlu0 %v921_v60  ;;  %v910_v61 = vpop.xlane.xlu1 %909 }
 0x730   :  { %vm914_vm1 = vcmp.eq.f32.partialorder %v906_v56, %v910_v61 }
 0x731   :  { %v916_v62 = vsel %vm914_vm1, %v3454_v1, 16.0 }
 0x732   :  { %v918_v24 = vsel %vm841_vm3, %v916_v62, inf }
 0x733   :  { %919 = vmin.xlane.f32.xlu1 %v918_v24 }
 0x7b8   :  { %v923_v29 = vpop.xlane.xlu0 %922 }
 0x7b9   :  { %vm925_vm2 = vcmp.eq.f32.partialorder %v3454_v1, %v923_v29 }
 0x7ba   :  { %v927_v39 = vsel %vm925_vm2, %v913_v58, %v905_v50  ;;  %v929_v34 = vsel %vm925_vm2, -3e+38, %v907_v51 }
 0x7bb   :  { %v933_v30 = vsel %vm841_vm3, %v929_v34, -inf }
 0x7bc   :  { %934 = vmax.xlane.f32.xlu0 %v933_v30  ;;  %v920_v40 = vpop.xlane.xlu1 %919 }
 0x7bd   :  { %vm924_vm4 = vcmp.eq.f32.partialorder %v3454_v1, %v920_v40 }
 0x7be   :  { %v926_v63 = vsel %vm924_vm4, %v910_v61, %v904_v54  ;;  %v928_v0 = vsel %vm924_vm4, -3e+38, %v906_v56 }
 0x7bf   :  { %v930_v17 = vsel %vm841_vm3, %v928_v0, -inf }
 0x7c0   :  { %931 = vmax.xlane.f32.xlu1 %v930_v17 }
 0x845   :  { %v935_v2 = vpop.xlane.xlu0 %934 }
 0x846   :  { %vm937_vm5 = vcmp.eq.f32.partialorder %v929_v34, %v935_v2 }
 0x847   :  { %v939_v3 = vsel %vm937_vm5, %v3454_v1, 16.0 }
 0x848   :  { %v943_v32 = vsel %vm841_vm3, %v939_v3, inf }
 0x849   :  { %944 = vmin.xlane.f32.xlu0 %v943_v32  ;;  %v932_v4 = vpop.xlane.xlu1 %931 }
 0x84a   :  { %vm936_vm6 = vcmp.eq.f32.partialorder %v928_v0, %v932_v4 }
 0x84b   :  { %v938_v5 = vsel %vm936_vm6, %v3454_v1, 16.0 }
 0x84c   :  { %v940_v6 = vsel %vm841_vm3, %v938_v5, inf }
 0x84d   :  { %941 = vmin.xlane.f32.xlu1 %v940_v6 }
 0x8d2   :  { %v945_v7 = vpop.xlane.xlu0 %944 }
 0x8d3   :  { %vm947_vm7 = vcmp.eq.f32.partialorder %v3454_v1, %v945_v7 }
 0x8d4   :  { %v949_v8 = vsel %vm947_vm7, %v935_v2, %v927_v39  ;;  %v951_v37 = vsel %vm947_vm7, -3e+38, %v929_v34 }
 0x8d5   :  { %v955_v9 = vsel %vm841_vm3, %v951_v37, -inf }
 0x8d6   :  { %956 = vmax.xlane.f32.xlu0 %v955_v9  ;;  %v942_v38 = vpop.xlane.xlu1 %941 }
 0x8d7   :  { %vm946_vm8 = vcmp.eq.f32.partialorder %v3454_v1, %v942_v38 }
 0x8d8   :  { %v948_v10 = vsel %vm946_vm8, %v932_v4, %v926_v63  ;;  %v950_v11 = vsel %vm946_vm8, -3e+38, %v928_v0 }
 0x8d9   :  { %v952_v12 = vsel %vm841_vm3, %v950_v11, -inf }
 0x8da   :  { %953 = vmax.xlane.f32.xlu1 %v952_v12 }
 0x95f   :  { %v957_v42 = vpop.xlane.xlu0 %956 }
 0x960   :  { %vm959_vm9 = vcmp.eq.f32.partialorder %v951_v37, %v957_v42 }
 0x961   :  { %v961_v33 = vsel %vm959_vm9, %v3454_v1, 16.0 }
 0x962   :  { %v965_v13 = vsel %vm841_vm3, %v961_v33, inf }
 0x963   :  { %966 = vmin.xlane.f32.xlu0 %v965_v13  ;;  %v954_v41 = vpop.xlane.xlu1 %953 }
 0x964   :  { %vm958_vm10 = vcmp.eq.f32.partialorder %v950_v11, %v954_v41 }
 0x965   :  { %v960_v14 = vsel %vm958_vm10, %v3454_v1, 16.0 }
 0x966   :  { %v962_v36 = vsel %vm841_vm3, %v960_v14, inf }
 0x967   :  { %963 = vmin.xlane.f32.xlu1 %v962_v36 }
 0x9ec   :  { %v967_v15 = vpop.xlane.xlu0 %966 }
 0x9ed   :  { %vm969_vm11 = vcmp.eq.f32.partialorder %v3454_v1, %v967_v15 }
 0x9ee   :  { %v971_v16 = vsel %vm969_vm11, %v957_v42, %v949_v8  ;;  %v973_v20 = vsel %vm969_vm11, -3e+38, %v951_v37 }
 0x9ef   :  { %v977_v23 = vsel %vm841_vm3, %v973_v20, -inf }
 0x9f0   :  { %978 = vmax.xlane.f32.xlu0 %v977_v23  ;;  %v964_v25 = vpop.xlane.xlu1 %963 }
 0x9f1   :  { %vm968_vm12 = vcmp.eq.f32.partialorder %v3454_v1, %v964_v25  ;;  %v1500_v25 = vpop.f32.mrf.mxu0 }
 0x9f2   :  { %v970_v26 = vsel %vm968_vm12, %v954_v41, %v948_v10  ;;  %v972_v27 = vsel %vm968_vm12, -3e+38, %v950_v11 }
 0x9f3   :  { %v974_v31 = vsel %vm841_vm3, %v972_v27, -inf }
 0x9f4   :  { %975 = vmax.xlane.f32.xlu1 %v974_v31  ;;  %v1502_v31 = vpop.f32.mrf.mxu0 }
 0xa79   :  { %v979_v35 = vpop.xlane.xlu0 %978 }
 0xa7a   :  { %vm981_vm13 = vcmp.eq.f32.partialorder %v973_v20, %v979_v35 }
 0xa7b   :  { %v983_v43 = vsel %vm981_vm13, %v3454_v1, 16.0 }
 0xa7c   :  { %v987_v44 = vsel %vm841_vm3, %v983_v43, inf }
 0xa7d   :  { %988 = vmin.xlane.f32.xlu0 %v987_v44  ;;  %v976_v18 = vpop.xlane.xlu1 %975  ;;  %v1504_v44 = vpop.f32.mrf.mxu0 }
 0xa7e   :  { %vm980_vm14 = vcmp.eq.f32.partialorder %v972_v27, %v976_v18 }
 0xa7f   :  { %v982_v45 = vsel %vm980_vm14, %v3454_v1, 16.0 }
 0xa80   :  { %v984_v46 = vsel %vm841_vm3, %v982_v45, inf  ;;  %v1506_v45 = vpop.f32.mrf.mxu0 }
 0xa81   :  { %985 = vmin.xlane.f32.xlu1 %v984_v46 }
 0xb06   :  { %v989_v47 = vpop.xlane.xlu0 %988 }
 0xb07   :  { %vm991_vm15 = vcmp.eq.f32.partialorder %v3454_v1, %v989_v47 }
 0xb08   :  { %v993_v48 = vsel %vm991_vm15, %v979_v35, %v971_v16  ;;  %v995_v49 = vsel %vm991_vm15, -3e+38, %v973_v20 }
 0xb09   :  { %v999_v50 = vsel %vm841_vm3, %v995_v49, -inf }
 0xb0a   :  { %1000 = vmax.xlane.f32.xlu0 %v999_v50  ;;  %v986_v51 = vpop.xlane.xlu1 %985 }
 0xb0b   :  { %vm990_vm0 = vcmp.eq.f32.partialorder %v3454_v1, %v986_v51 }
 0xb0c   :  { %v992_v52 = vsel %vm990_vm0, %v976_v18, %v970_v26  ;;  %v994_v53 = vsel %vm990_vm0, -3e+38, %v972_v27  ;;  %v1543_v26 = vpop.f32.mrf.mxu1 }
 0xb0d   :  { %v996_v54 = vsel %vm841_vm3, %v994_v53, -inf }
 0xb0e   :  { %997 = vmax.xlane.f32.xlu1 %v996_v54  ;;  %v1545_v35 = vpop.f32.mrf.mxu1 }
 0xb0f   :  { %v1546_v54 = vadd.f32 %v1545_v35, %v1502_v31  ;;  %v2571_v31 = vld [vmem:[%s3659_s6 + $0x4] ss:$8 sm:$0x3] }
 0xb10   :  { %v1547_v18 = vpop.f32.mrf.mxu1 }
 0xb12   :  { %v1549_v46 = vpop.f32.mrf.mxu1 }
 0xb93   :  { %v1001_v56 = vpop.xlane.xlu0 %1000 }
 0xb94   :  { %vm1003_vm1 = vcmp.eq.f32.partialorder %v995_v49, %v1001_v56 }
 0xb95   :  { %v1005_v57 = vsel %vm1003_vm1, %v3454_v1, 16.0 }
 0xb96   :  { %v1009_v58 = vsel %vm841_vm3, %v1005_v57, inf }
 0xb97   :  { %1010 = vmin.xlane.f32.xlu0 %v1009_v58  ;;  %v998_v59 = vpop.xlane.xlu1 %997 }
 0xb98   :  { %vm1002_vm2 = vcmp.eq.f32.partialorder %v994_v53, %v998_v59 }
 0xb99   :  { %v1004_v60 = vsel %vm1002_vm2, %v3454_v1, 16.0 }
 0xb9a   :  { %v1006_v61 = vsel %vm841_vm3, %v1004_v60, inf }
 0xb9b   :  { %1007 = vmin.xlane.f32.xlu1 %v1006_v61 }
 0xc20   :  { %v1011_v62 = vpop.xlane.xlu0 %1010 }
 0xc21   :  { %vm1013_vm4 = vcmp.eq.f32.partialorder %v3454_v1, %v1011_v62 }
 0xc22   :  { %v1015_v24 = vsel %vm1013_vm4, %v1001_v56, %v993_v48  ;;  %v1017_v29 = vsel %vm1013_vm4, -3e+38, %v995_v49  ;;  %v1550_v48 = vadd.f32 %v1549_v46, %v1506_v45  ;;  %v1710_v46 = vrot.slane %v2571_v31, %v3385_v19 }
 0xc23   :  { %v1021_v39 = vsel %vm841_vm3, %v1017_v29, -inf }
 0xc24   :  { %1022 = vmax.xlane.f32.xlu0 %v1021_v39  ;;  %v1008_v34 = vpop.xlane.xlu1 %1007 }
 0xc25   :  { %vm1012_vm5 = vcmp.eq.f32.partialorder %v3454_v1, %v1008_v34 }
 0xc26   :  { %v1014_v30 = vsel %vm1012_vm5, %v998_v59, %v992_v52  ;;  %v1016_v40 = vsel %vm1012_vm5, -3e+38, %v994_v53  ;;  %v1544_v53 = vadd.f32 %v1543_v26, %v1500_v25  ;;  %v2569_v59 = vld [vmem:[%s3659_s6 + $0x2] ss:$8 sm:$0x3] }
 0xc27   :  { %v1018_v63 = vsel %vm841_vm3, %v1016_v40, -inf  ;;  %v1647_v62 = vrot.slane %v2569_v59, %v3385_v19 }
 0xc28   :  { %1019 = vmax.xlane.f32.xlu1 %v1018_v63 }
 0xcad   :  { %v1023_v0 = vpop.xlane.xlu0 %1022 }
 0xcae   :  { %vm1025_vm6 = vcmp.eq.f32.partialorder %v1017_v29, %v1023_v0 }
 0xcaf   :  { %v1027_v17 = vsel %vm1025_vm6, %v3454_v1, 16.0 }
 0xcb0   :  { %v1031_v2 = vsel %vm841_vm3, %v1027_v17, inf }
 0xcb1   :  { %1032 = vmin.xlane.f32.xlu0 %v1031_v2  ;;  %v1020_v3 = vpop.xlane.xlu1 %1019 }
 0xcb2   :  { %vm1024_vm7 = vcmp.eq.f32.partialorder %v1016_v40, %v1020_v3 }
 0xcb3   :  { %v1026_v32 = vsel %vm1024_vm7, %v3454_v1, 16.0 }
 0xcb4   :  { %v1028_v4 = vsel %vm841_vm3, %v1026_v32, inf }
 0xcb5   :  { %1029 = vmin.xlane.f32.xlu1 %v1028_v4 }
 0xd3a   :  { %v1033_v5 = vpop.xlane.xlu0 %1032 }
 0xd3b   :  { %vm1035_vm8 = vcmp.eq.f32.partialorder %v3454_v1, %v1033_v5 }
 0xd3c   :  { %v1037_v6 = vsel %vm1035_vm8, %v1023_v0, %v1015_v24  ;;  %v1039_v7 = vsel %vm1035_vm8, -3e+38, %v1017_v29  ;;  %v1651_v24 = vrot.slane %v2569_v59, %v3394_v22 }
 0xd3d   :  { %v1043_v8 = vsel %vm841_vm3, %v1039_v7, -inf }
 0xd3e   :  { %1044 = vmax.xlane.f32.xlu0 %v1043_v8  ;;  %v1030_v37 = vpop.xlane.xlu1 %1029 }
 0xd3f   :  { %vm1034_vm9 = vcmp.eq.f32.partialorder %v3454_v1, %v1030_v37 }
 0xd40   :  { %v1036_v9 = vsel %vm1034_vm9, %v1020_v3, %v1014_v30  ;;  %v1038_v38 = vsel %vm1034_vm9, -3e+38, %v1016_v40 }
 0xd41   :  { %v1040_v10 = vsel %vm841_vm3, %v1038_v38, -inf }
 0xd42   :  { %1041 = vmax.xlane.f32.xlu1 %v1040_v10 }
 0xdc7   :  { %v1045_v11 = vpop.xlane.xlu0 %1044 }
 0xdc8   :  { %vm1047_vm10 = vcmp.eq.f32.partialorder %v1039_v7, %v1045_v11 }
 0xdc9   :  { %v1049_v12 = vsel %vm1047_vm10, %v3454_v1, 16.0 }
 0xdca   :  { %v1053_v42 = vsel %vm841_vm3, %v1049_v12, inf }
 0xdcb   :  { %1054 = vmin.xlane.f32.xlu0 %v1053_v42  ;;  %v1042_v33 = vpop.xlane.xlu1 %1041 }
 0xdcc   :  { %vm1046_vm11 = vcmp.eq.f32.partialorder %v1038_v38, %v1042_v33 }
 0xdcd   :  { %v1048_v13 = vsel %vm1046_vm11, %v3454_v1, 16.0 }
 0xdce   :  { %v1050_v41 = vsel %vm841_vm3, %v1048_v13, inf }
 0xdcf   :  { %1051 = vmin.xlane.f32.xlu1 %v1050_v41 }
 0xe54   :  { %v1055_v14 = vpop.xlane.xlu0 %1054 }
 0xe55   :  { %vm1057_vm12 = vcmp.eq.f32.partialorder %v3454_v1, %v1055_v14 }
 0xe56   :  { %v3546_v36 = vsel %vm1057_vm12, %v1045_v11, %v1037_v6 }
 0xe57   :  { %v1063_v15 = vsel %vm841_vm3, %v3546_v36, 0.0 }
 0xe58   :  { %1064 = vadd.xlane.f32.xlu0 %v1063_v15  ;;  %v1052_v16 = vpop.xlane.xlu1 %1051 }
 0xe59   :  { %vm1056_vm13 = vcmp.eq.f32.partialorder %v3454_v1, %v1052_v16  ;;  %v1548_v1 = vadd.f32 %v1547_v18, %v1504_v44 }
 0xe5a   :  { %v3551_v20 = vsel %vm1056_vm13, %v1042_v33, %v1036_v9 }
 0xe5b   :  { %v1060_v23 = vsel %vm841_vm3, %v3551_v20, 0.0 }
 0xe5c   :  { %1061 = vadd.xlane.f32.xlu1 %v1060_v23 }
 0xee1   :  { %v1065_v27 = vpop.xlane.xlu0 %1064 }
 0xee2   :  { %3015 = vrsqrt.f32 %v1065_v27  ;;  %vm1067_vm14 = vcmp.gt.f32.partialorder %v1065_v27, 0.0  ;;  %v2570_v27 = vld [vmem:[%s3659_s6 + $0x3] ss:$8 sm:$0x3] }
 0xee3   :  { %v1695_v35 = vrot.slane %v2570_v27, %v3385_v19 }
 0xee5   :  { %v1062_v43 = vpop.xlane.xlu1 %1061 }
 0xee6   :  { %3017 = vrsqrt.f32 %v1062_v43  ;;  %vm1066_vm15 = vcmp.gt.f32.partialorder %v1062_v43, 0.0  ;;  %v1699_v43 = vrot.slane %v2570_v27, %v3394_v22  ;;  %v2987_v27 = vld [vmem:[#allocation6 + $0x160] ss:$16 sps:$4 sm:$0xff]  }
 0xeef   :  { %v3016_v47 = vpop.eup %3015 }
 0xef0   :  { %v3555_v49 = vsel %vm1067_vm14, %v3016_v47, 0.0  ;;  %v1714_v47 = vrot.slane %v2571_v31, %v3394_v22 }
 0xef1   :  { %v1555_v50 = vmul.f32 %v1550_v48, %v3555_v49  ;;  %v1554_v51 = vmul.f32 %v1548_v1, %v3555_v49 }
 0xef3   :  { %v3018_v52 = vpop.eup %3017  ;;  %1590 = vmatprep.subr.mxu0 %v1555_v50 }
 0xef4   :  { %v3559_v56 = vsel %vm1066_vm15, %v3018_v52, 0.0  ;;  %1591 = vmatpush1.msra.mxu0 %v1554_v51 }
 0xef5   :  { %v1553_v57 = vmul.f32 %v1546_v54, %v3559_v56  ;;  %v1552_v58 = vmul.f32 %v1544_v53, %v3559_v56 }
 0xef7   :  { %1592 = vmatprep.subr.mxu0 %v1553_v57 }
 0xef8   :  { %1593 = vmatpush1.msra.mxu0 %v1552_v58 }
 0xef9   :  { %2636 = vmatmul.mubr.msk.f32.vlgmr.msra.gmra.mxu0 %vm841_vm3, %v3551_v20 }
 0xefa   :  { %1632 = vmatprep.mubr.f32.mxu0 %v3130_v55 }
 0xefd   :  { %2637 = vmatmul.mubr.msk.f32.gmra.mxu0 %vm841_vm3, %v3546_v36 }
 0xfb9   :  { %v1628_v60 = vpop.f32.mrf.mxu0 }
 0xfba   :  { %v1639_v61 = vmul.f32 %v1628_v60, %v3559_v56 }
 0xfbb   :  { %v1630_v29 = vpop.f32.mrf.mxu0 }
 0xfbc   :  { %v1640_v39 = vmul.f32 %v1630_v29, %v3559_v56  ;;  %v1654_v30 = vadd.f32 %v1647_v62, %v1639_v61 }
 0xfbd   :  { %v1634_v34 = vpop.f32.mrf.mxu0 }
 0xfbe   :  { %v1655_v40 = vadd.f32 %v1651_v24, %v1640_v39  ;;  %v1641_v63 = vmul.f32 %v1634_v34, %v3555_v49 }
 0xfbf   :  { %v1636_v0 = vpop.f32.mrf.mxu0 }
 0xfc0   :  { %v1642_v17 = vmul.f32 %v1636_v0, %v3555_v49  ;;  %v1658_v2 = vadd.f32 %v1655_v40, %v1654_v30  ;;  %v1656_v3 = vadd.f32 %v1647_v62, %v1641_v63 }
 0xfc2   :  { %v1657_v32 = vadd.f32 %v1651_v24, %v1642_v17  ;;  %1659 = vadd.xlane.f32.xlu1 %v1658_v2  ;;  %v2915_v17 = vld [vmem:[#allocation6 + $0xe0] ss:$16 sps:$4 sm:$0xff]   ;;  %v2917_v2 = vld [vmem:[#allocation6 + $0xe4] ss:$16 sps:$4 sm:$0xff]  }
 0xfc3   :  { %2241 = vmatprep.subr.bf16.mxu0 %v2917_v2  ;;  %v2972_v2 = vld [vmem:[#allocation6 + $0x1c8] ss:$16 sps:$4 sm:$0xff]  }
 0xfc4   :  { %v1661_v4 = vadd.f32 %v1657_v32, %v1656_v3  ;;  %2242 = vmatpush1.bf16.msra.mxu0 %v2915_v17  ;;  %v2974_v17 = vld [vmem:[#allocation6 + $0x1cc] ss:$16 sps:$4 sm:$0xff]  }
 0xfc6   :  { %1662 = vadd.xlane.f32.xlu0 %v1661_v4  ;;  %v2929_v4 = vld [vmem:[#allocation6 + $0xa4] ss:$16 sps:$4 sm:$0xff]  }
0x104b   :  { %v1660_v5 = vpop.xlane.xlu1 %1659 }
0x104c   :  { %v1665_v6 = vmul.f32 0.00390625, %v1660_v5  ;;  %v2927_v5 = vld [vmem:[#allocation6 + $0xa0] ss:$16 sps:$4 sm:$0xff]  }
0x104e   :  { %v1667_v7 = vsub.f32 %v1654_v30, %v1665_v6  ;;  %v1668_v8 = vsub.f32 %v1655_v40, %v1665_v6  ;;  %v2935_v6 = vld [vmem:[#allocation6 + $0x84] ss:$16 sps:$4 sm:$0xff]  }
0x104f   :  { %v1663_v37 = vpop.xlane.xlu0 %1662 }
0x1050   :  { %v1666_v9 = vmul.f32 0.00390625, %v1663_v37  ;;  %v1671_v38 = vmul.f32 %v1667_v7, %v1667_v7  ;;  %v1672_v10 = vmul.f32 %v1668_v8, %v1668_v8  ;;  %v2939_v37 = vld [vmem:[#allocation6 + $0x60] ss:$16 sps:$4 sm:$0xff]  }
0x1052   :  { %v1669_v11 = vsub.f32 %v1656_v3, %v1666_v9  ;;  %v1670_v12 = vsub.f32 %v1657_v32, %v1666_v9  ;;  %v1675_v42 = vadd.f32 %v1672_v10, %v1671_v38  ;;  %v2923_v3 = vld [vmem:[#allocation6 + $0xc4] ss:$16 sps:$4 sm:$0xff]   ;;  %v2921_v32 = vld [vmem:[#allocation6 + $0xc0] ss:$16 sps:$4 sm:$0xff]  }
0x1053   :  { %2243 = vmatprep.subr.bf16.mxu0 %v2923_v3  ;;  %v2947_v9 = vld [vmem:[#allocation6 + $0x44] ss:$16 sps:$4 sm:$0xff]   ;;  %v2945_v38 = vld [vmem:[#allocation6 + $0x40] ss:$16 sps:$4 sm:$0xff]   ;;  %v2980_v3 = vld [vmem:[#allocation6 + $0x1ac] ss:$16 sps:$4 sm:$0xff]  }
0x1054   :  { %1676 = vadd.xlane.f32.xlu1 %v1675_v42  ;;  %v1673_v33 = vmul.f32 %v1669_v11, %v1669_v11  ;;  %v1674_v13 = vmul.f32 %v1670_v12, %v1670_v12  ;;  %2244 = vmatpush1.bf16.msra.mxu0 %v2921_v32  ;;  %v2953_v10 = vld [vmem:[#allocation6 + $0x24] ss:$16 sps:$4 sm:$0xff]   ;;  %v2957_v42 = vld [vmem:[#allocation6] ss:$16 sps:$4 sm:$0xff]   ;;  %v2978_v32 = vld [vmem:[#allocation6 + $0x1a8] ss:$16 sps:$4 sm:$0xff]  }
0x1055   :  { %2245 = vmatprep.subr.bf16.mxu0 %v2929_v4  ;;  %v2986_v4 = vld [vmem:[#allocation6 + $0x18c] ss:$16 sps:$4 sm:$0xff]  }
0x1056   :  { %v1678_v41 = vadd.f32 %v1674_v13, %v1673_v33  ;;  %v2965_v33 = vld [vmem:[#allocation6 + $0x1e4] ss:$16 sps:$4 sm:$0xff]   ;;  %v2963_v13 = vld [vmem:[#allocation6 + $0x1e0] ss:$16 sps:$4 sm:$0xff]  }
0x1058   :  { %1679 = vadd.xlane.f32.xlu0 %v1678_v41  ;;  %2246 = vmatpush1.bf16.msra.mxu0 %v2927_v5  ;;  %v2971_v41 = vld [vmem:[#allocation6 + $0x1c4] ss:$16 sps:$4 sm:$0xff]   ;;  %v2984_v5 = vld [vmem:[#allocation6 + $0x188] ss:$16 sps:$4 sm:$0xff]  }
0x1059   :  { %2247 = vmatprep.subr.bf16.mxu0 %v2935_v6  ;;  %v2992_v6 = vld [vmem:[#allocation6 + $0x16c] ss:$16 sps:$4 sm:$0xff]  }
0x10dd   :  { %v1677_v14 = vpop.xlane.xlu1 %1676 }
0x10de   :  { %v1681_v15 = vmul.f32 0.00390625, %v1677_v14  ;;  %v2969_v14 = vld [vmem:[#allocation6 + $0x1c0] ss:$16 sps:$4 sm:$0xff]  }
0x10e0   :  { %v1683_v16 = vadd.f32 1e-05, %v1681_v15  ;;  %v2977_v15 = vld [vmem:[#allocation6 + $0x1a4] ss:$16 sps:$4 sm:$0xff]  }
0x10e1   :  { %v1680_v23 = vpop.xlane.xlu0 %1679 }
0x10e2   :  { %3019 = vrsqrt.f32 %v1683_v16  ;;  %v1682_v25 = vmul.f32 0.00390625, %v1680_v23  ;;  %v2975_v16 = vld [vmem:[#allocation6 + $0x1a0] ss:$16 sps:$4 sm:$0xff]   ;;  %v2983_v23 = vld [vmem:[#allocation6 + $0x184] ss:$16 sps:$4 sm:$0xff]  }
0x10e4   :  { %v1684_v26 = vadd.f32 1e-05, %v1682_v25  ;;  %v2981_v25 = vld [vmem:[#allocation6 + $0x180] ss:$16 sps:$4 sm:$0xff]  }
0x10e6   :  { %3021 = vrsqrt.f32 %v1684_v26  ;;  %v2989_v26 = vld [vmem:[#allocation6 + $0x164] ss:$16 sps:$4 sm:$0xff]  }
0x10ef   :  { %v3020_v44 = vpop.eup %3019 }
0x10f0   :  { %v1687_v18 = vmul.f32 %v3020_v44, %v1667_v7  ;;  %v1688_v45 = vmul.f32 %v3020_v44, %v1668_v8  ;;  %v2933_v7 = vld [vmem:[#allocation6 + $0x80] ss:$16 sps:$4 sm:$0xff]   ;;  %v2941_v8 = vld [vmem:[#allocation6 + $0x64] ss:$16 sps:$4 sm:$0xff]  }
0x10f1   :  { %2248 = vmatpush1.bf16.msra.mxu0 %v2933_v7  ;;  %v2990_v7 = vld [vmem:[#allocation6 + $0x168] ss:$16 sps:$4 sm:$0xff]  }
0x10f2   :  { %v1702_v1 = vmul.f32 %v1695_v35, %v1687_v18  ;;  %v1703_v48 = vmul.f32 %v1699_v43, %v1688_v45  ;;  %2249 = vmatprep.subr.bf16.mxu0 %v2941_v8  ;;  %v2995_v8 = vld [vmem:[#allocation6 + $0x144] ss:$16 sps:$4 sm:$0xff]  }
0x10f3   :  { %v3022_v50 = vpop.eup %3021 }
0x10f4   :  { %v1717_v51 = vadd.f32 %v1710_v46, %v1702_v1  ;;  %v1718_v52 = vadd.f32 %v1714_v47, %v1703_v48  ;;  %v1689_v53 = vmul.f32 %v3022_v50, %v1669_v11  ;;  %v1690_v54 = vmul.f32 %v3022_v50, %v1670_v12  ;;  %v2951_v11 = vld [vmem:[#allocation6 + $0x20] ss:$16 sps:$4 sm:$0xff]   ;;  %v2959_v12 = vld [vmem:[#allocation6 + $0x4] ss:$16 sps:$4 sm:$0xff]  }
0x10f5   :  { %2250 = vmatpush1.bf16.msra.mxu0 %v2939_v37  ;;  %v2998_v37 = vld [vmem:[#allocation6 + $0x14c] ss:$16 sps:$4 sm:$0xff]  }
0x10f6   :  { %v3587_v57 = vmax.f32 %v1717_v51, 0.0  ;;  %v3589_v58 = vmax.f32 %v1718_v52, 0.0  ;;  %v1704_v59 = vmul.f32 %v1695_v35, %v1689_v53  ;;  %v1705_v60 = vmul.f32 %v1699_v43, %v1690_v54  ;;  %2251 = vmatprep.subr.bf16.mxu0 %v2947_v9  ;;  %v2920_v53 = vld [vmem:[#allocation6 + $0xec] ss:$16 sps:$4 sm:$0xff]   ;;  %v2993_v9 = vld [vmem:[#allocation6 + $0x140] ss:$16 sps:$4 sm:$0xff]  }
0x10f8   :  { %v1725_v61 = vmul.f32 %v3587_v57, %v3587_v57  ;;  %v1726_v62 = vmul.f32 %v3589_v58, %v3589_v58  ;;  %v1719_v24 = vadd.f32 %v1710_v46, %v1704_v59  ;;  %v1720_v29 = vadd.f32 %v1714_v47, %v1705_v60  ;;  %v2918_v59 = vld [vmem:[#allocation6 + $0xe8] ss:$16 sps:$4 sm:$0xff]   ;;  %v2926_v60 = vld [vmem:[#allocation6 + $0xcc] ss:$16 sps:$4 sm:$0xff]  }
0x10f9   :  { %2252 = vmatpush1.bf16.msra.mxu0 %v2945_v38  ;;  %v2996_v38 = vld [vmem:[#allocation6 + $0x148] ss:$16 sps:$4 sm:$0xff]  }
0x10fa   :  { %v1729_v39 = vadd.f32 %v1726_v62, %v1725_v61  ;;  %v3595_v34 = vmax.f32 %v1719_v24, 0.0  ;;  %v3597_v30 = vmax.f32 %v1720_v29, 0.0  ;;  %2253 = vmatprep.subr.bf16.mxu0 %v2953_v10  ;;  %v2930_v61 = vld [vmem:[#allocation6 + $0xa8] ss:$16 sps:$4 sm:$0xff]   ;;  %v2938_v62 = vld [vmem:[#allocation6 + $0x8c] ss:$16 sps:$4 sm:$0xff]  }
0x10fb   :  { %v2936_v24 = vld [vmem:[#allocation6 + $0x88] ss:$16 sps:$4 sm:$0xff]   ;;  %v2944_v29 = vld [vmem:[#allocation6 + $0x6c] ss:$16 sps:$4 sm:$0xff]   ;;  %v3001_v10 = vld [vmem:[#allocation6 + $0x124] ss:$16 sps:$4 sm:$0xff]  }
0x10fc   :  { %1730 = vadd.xlane.f32.xlu1 %v1729_v39  ;;  %v1727_v40 = vmul.f32 %v3595_v34, %v3595_v34  ;;  %v1728_v63 = vmul.f32 %v3597_v30, %v3597_v30  ;;  %v2950_v39 = vld [vmem:[#allocation6 + $0x4c] ss:$16 sps:$4 sm:$0xff]  }
0x10fd   :  { %2254 = vmatpush1.bf16.msra.mxu0 %v2951_v11  ;;  %v3004_v11 = vld [vmem:[#allocation6 + $0x12c] ss:$16 sps:$4 sm:$0xff]  }
0x10fe   :  { %v1732_v0 = vadd.f32 %v1728_v63, %v1727_v40  ;;  %2255 = vmatprep.subr.bf16.mxu0 %v2959_v12  ;;  %v2960_v40 = vld [vmem:[#allocation6 + $0x8] ss:$16 sps:$4 sm:$0xff]   ;;  %v2968_v63 = vld [vmem:[#allocation6 + $0x1ec] ss:$16 sps:$4 sm:$0xff]   ;;  %v2999_v12 = vld [vmem:[#allocation6 + $0x120] ss:$16 sps:$4 sm:$0xff]  }
0x1100   :  { %1733 = vadd.xlane.f32.xlu0 %v1732_v0  ;;  %v2966_v0 = vld [vmem:[#allocation6 + $0x1e8] ss:$16 sps:$4 sm:$0xff]  }
0x1101   :  { %2256 = vmatpush1.bf16.msra.mxu0 %v2957_v42  ;;  %v3002_v42 = vld [vmem:[#allocation6 + $0x128] ss:$16 sps:$4 sm:$0xff]  }
0x1102   :  { %2257 = vmatprep.subr.bf16.mxu0 %v2965_v33  ;;  %v3007_v33 = vld [vmem:[#allocation6 + $0x104] ss:$16 sps:$4 sm:$0xff]  }
0x1105   :  { %2258 = vmatpush2.bf16.msra.mxu0 %v2963_v13  ;;  %v3010_v13 = vld [vmem:[#allocation6 + $0x10c] ss:$16 sps:$4 sm:$0xff]  }
0x1106   :  { %2259 = vmatprep.subr.bf16.mxu0 %v2971_v41  ;;  %v3005_v41 = vld [vmem:[#allocation6 + $0x100] ss:$16 sps:$4 sm:$0xff]  }
0x1109   :  { %2260 = vmatpush2.bf16.msra.mxu0 %v2969_v14  ;;  %v3008_v14 = vld [vmem:[#allocation6 + $0x108] ss:$16 sps:$4 sm:$0xff]  }
0x110a   :  { %2261 = vmatprep.subr.bf16.mxu0 %v2977_v15 }
0x110d   :  { %2262 = vmatpush2.bf16.msra.mxu0 %v2975_v16 }
0x110e   :  { %2263 = vmatprep.subr.bf16.mxu0 %v2983_v23 }
0x1111   :  { %2264 = vmatpush2.bf16.msra.mxu0 %v2981_v25 }
0x1112   :  { %2265 = vmatprep.subr.bf16.mxu0 %v2989_v26 }
0x1115   :  { %2266 = vmatpush2.bf16.msra.mxu0 %v2987_v27 }
0x1116   :  { %2267 = vmatprep.subr.bf16.mxu0 %v2995_v8 }
0x1119   :  { %2268 = vmatpush2.bf16.msra.mxu0 %v2993_v9 }
0x111a   :  { %2269 = vmatprep.subr.bf16.mxu0 %v3001_v10 }
0x111d   :  { %2270 = vmatpush2.bf16.msra.mxu0 %v2999_v12 }
0x111e   :  { %2271 = vmatprep.subr.bf16.mxu0 %v3007_v33 }
0x1121   :  { %2272 = vmatpush2.bf16.msra.mxu0 %v3005_v41 }
0x1185   :  { %v1731_v31 = vpop.xlane.xlu1 %1730 }
0x1186   :  { %v1735_v35 = vmax.f32 %v1731_v31, 1e-24 }
0x1188   :  { %3023 = vrsqrt.f32 %v1735_v35 }
0x1189   :  { %v1734_v43 = vpop.xlane.xlu0 %1733 }
0x118a   :  { %v1736_v44 = vmax.f32 %v1734_v43, 1e-24 }
0x118c   :  { %3025 = vrsqrt.f32 %v1736_v44 }
0x1195   :  { %v3024_v18 = vpop.eup %3023 }
0x1196   :  { %v1740_v1 = vmul.f32 %v3024_v18, %v3589_v58  ;;  %v1739_v48 = vmul.f32 %v3024_v18, %v3587_v57  ;;  %v2924_v57 = vld [vmem:[#allocation6 + $0xc8] ss:$16 sps:$4 sm:$0xff]   ;;  %v2932_v58 = vld [vmem:[#allocation6 + $0xac] ss:$16 sps:$4 sm:$0xff]  }
0x1197   :  { %v2638_v18 = vld [vmem:[%s3659_s6 + $0x5] ss:$8 sm:$0xf] }
0x1198   :  { %v1750_v52 = vmul.f32 %v1740_v1, %v3559_v56  ;;  %v1749_v54 = vmul.f32 %v1739_v48, %v3559_v56 }
0x1199   :  { %v3026_v45 = vpop.eup %3025 }
0x119a   :  { %v1742_v46 = vmul.f32 %v3026_v45, %v3597_v30  ;;  %v1741_v47 = vmul.f32 %v3026_v45, %v3595_v34  ;;  %v2956_v34 = vld [vmem:[#allocation6 + $0x2c] ss:$16 sps:$4 sm:$0xff]   ;;  %v2954_v30 = vld [vmem:[#allocation6 + $0x28] ss:$16 sps:$4 sm:$0xff]   ;;  %v1904_v45 = vrot.slane %v2638_v18, %v3385_v19 }
0x119c   :  { %v1752_v50 = vmul.f32 %v1742_v46, %v3555_v49  ;;  %v1751_v51 = vmul.f32 %v1741_v47, %v3555_v49  ;;  %v1908_v46 = vrot.slane %v2638_v18, %v3394_v22 }
0x119e   :  { %1781 = vmatprep.subr.mxu1 %v1752_v50 }
0x119f   :  { %1782 = vmatpush1.msra.mxu1 %v1751_v51 }
0x11a0   :  { %1783 = vmatprep.subr.mxu1 %v1750_v52  ;;  %v1916_v52 = vrot.slane %v2638_v18, %v3400_v28 }
0x11a1   :  { %1784 = vmatpush1.msra.mxu1 %v1749_v54 }
0x11a2   :  { %2641 = vmatmul.mubr.msk.f32.vlgmr.msra.gmra.mxu1 %vm841_vm3, %v3551_v20  ;;  %2284 = vmatprep.subr.bf16.mxu1 %v2920_v53  ;;  %v2942_v20 = vld [vmem:[#allocation6 + $0x68] ss:$16 sps:$4 sm:$0xff]  }
0x11a3   :  { %1823 = vmatprep.mubr.f32.mxu1 %v3130_v55  ;;  %2285 = vmatpush1.bf16.msra.mxu1 %v2918_v59  ;;  %v2948_v55 = vld [vmem:[#allocation6 + $0x48] ss:$16 sps:$4 sm:$0xff]  }
0x11a4   :  { %2286 = vmatprep.subr.bf16.mxu1 %v2926_v60 }
0x11a6   :  { %2642 = vmatmul.mubr.msk.f32.gmra.mxu1 %vm841_vm3, %v3546_v36  ;;  %v2962_v36 = vld [vmem:[#allocation6 + $0xc] ss:$16 sps:$4 sm:$0xff]  }
0x11a7   :  { %2287 = vmatpush1.bf16.msra.mxu1 %v2924_v57 }
0x11a8   :  { %2288 = vmatprep.subr.bf16.mxu1 %v2932_v58 }
0x11ab   :  { %2289 = vmatpush1.bf16.msra.mxu1 %v2930_v61 }
0x11ac   :  { %2290 = vmatprep.subr.bf16.mxu1 %v2938_v62 }
0x11af   :  { %2291 = vmatpush1.bf16.msra.mxu1 %v2936_v24 }
0x11b0   :  { %2292 = vmatprep.subr.bf16.mxu1 %v2944_v29 }
0x11b3   :  { %2293 = vmatpush1.bf16.msra.mxu1 %v2942_v20 }
0x11b4   :  { %2294 = vmatprep.subr.bf16.mxu1 %v2950_v39 }
0x11b7   :  { %2295 = vmatpush1.bf16.msra.mxu1 %v2948_v55 }
0x11b8   :  { %2296 = vmatprep.subr.bf16.mxu1 %v2956_v34 }
0x11bb   :  { %2297 = vmatpush1.bf16.msra.mxu1 %v2954_v30 }
0x11bc   :  { %2298 = vmatprep.subr.bf16.mxu1 %v2962_v36 }
0x11bf   :  { %2299 = vmatpush1.bf16.msra.mxu1 %v2960_v40 }
0x11c0   :  { %2300 = vmatprep.subr.bf16.mxu1 %v2968_v63 }
0x11c3   :  { %2301 = vmatpush2.bf16.msra.mxu1 %v2966_v0 }
0x11c4   :  { %2302 = vmatprep.subr.bf16.mxu1 %v2974_v17 }
0x11c7   :  { %2303 = vmatpush2.bf16.msra.mxu1 %v2972_v2 }
0x11c8   :  { %2304 = vmatprep.subr.bf16.mxu1 %v2980_v3 }
0x11cb   :  { %2305 = vmatpush2.bf16.msra.mxu1 %v2978_v32 }
0x11cc   :  { %2306 = vmatprep.subr.bf16.mxu1 %v2986_v4 }
0x11cf   :  { %2307 = vmatpush2.bf16.msra.mxu1 %v2984_v5 }
0x11d0   :  { %2308 = vmatprep.subr.bf16.mxu1 %v2992_v6 }
0x11d3   :  { %2309 = vmatpush2.bf16.msra.mxu1 %v2990_v7 }
0x11d4   :  { %2310 = vmatprep.subr.bf16.mxu1 %v2998_v37 }
0x11d7   :  { %2311 = vmatpush2.bf16.msra.mxu1 %v2996_v38 }
0x11d8   :  { %2312 = vmatprep.subr.bf16.mxu1 %v3004_v11 }
0x11db   :  { %2313 = vmatpush2.bf16.msra.mxu1 %v3002_v42 }
0x11dc   :  { %2314 = vmatprep.subr.bf16.mxu1 %v3010_v13 }
0x11df   :  { %2315 = vmatpush2.bf16.msra.mxu1 %v3008_v14 }
0x1262   :  { %v1819_v15 = vpop.f32.mrf.mxu1 }
0x1263   :  { %v1830_v35 = vmul.f32 %v1819_v15, %v3559_v56 }
0x1264   :  { %v1821_v16 = vpop.f32.mrf.mxu1 }
0x1265   :  { %v1831_v27 = vmul.f32 %v1821_v16, %v3559_v56 }
0x1266   :  { %v1825_v23 = vpop.f32.mrf.mxu1 }
0x1267   :  { %v1832_v25 = vmul.f32 %v1825_v23, %v3555_v49 }
0x1268   :  { %v1827_v26 = vpop.f32.mrf.mxu1 }
0x1269   :  { %v1833_v31 = vmul.f32 %v1827_v26, %v3555_v49  ;;  %v1834_v44 = vpack.c.bf16 %v1832_v25, %v1830_v35  ;;  %v1912_v49 = vrot.slane %v2638_v18, %v3391_v21  ;;  %v2640_v18 = vld [vmem:[%s3659_s6 + $0x7] ss:$8 sm:$0xf] }
0x126b   :  { %v1835_v43 = vpack.c.bf16 %v1833_v31, %v1831_v27 }
0x126d   :  { %2273 = vmatprep.mubr.bf16.mxu0 %v1835_v43  ;;  %2316 = vmatprep.mubr.bf16.mxu1 %v1835_v43 }
0x126e   :  { %2274 = vmatmul.mubr.bf16.vlgmr.msra.gmra.mxu0 %v1834_v44  ;;  %2317 = vmatmul.mubr.bf16.vlgmr.msra.gmra.mxu1 %v1834_v44  ;;  %v2639_v44 = vld [vmem:[%s3659_s6 + $0x6] ss:$8 sm:$0xf]  ;;  %s3131_s6 = smov [#allocation8]  }
0x126f   :  { %s2489_s21 = sshll.u32 %s3131_s6, 4  ;;  %s2490_s21 = int_to_ptr.vmem [resolvable:$true] %s2489_s21 }
0x1270   :  { %s3075_s22 = scalar_lea.vmem %s2490_s21, 1024  ;;  %p3080_p11 = scmp.lt.s32.totalorder %s2490_s21, %s2490_s21 }
0x1271   :  { %p3076_p10 = scmp.ne.s32.totalorder %s2490_s21, %s3075_s22  ;;  %p3081_p12 = scmp.lt.s32.totalorder %s3075_s22, %s3075_s22 }
0x1273   :  { %p3082_p13 = por %p3081_p12, %p3080_p11 }
0x1275   :  { %p3083_p0 = pnand %p3082_p13, %p3076_p10 }
0x132e   :  { %v2275_v47 = vpop.f32.mrf.mxu0  ;;  %v2318_v1 = vpop.f32.mrf.mxu1 }
0x132f   :  { %v2276_v50 = vadd.f32 %v2275_v47, %v1904_v45  ;;  %v2319_v59 = vadd.f32 %v2318_v1, %v1912_v49  ;;  %v2392_v47 = vrot.slane %v2639_v44, %v3391_v21  ;;  %v2396_v1 = vrot.slane %v2639_v44, %v3400_v28 }
0x1330   :  { %v2277_v48 = vpop.f32.mrf.mxu0  ;;  %v2320_v56 = vpop.f32.mrf.mxu1 }
0x1331   :  { %v2278_v51 = vadd.f32 %v2277_v48, %v1908_v46  ;;  %v2321_v58 = vadd.f32 %v2320_v56, %v1916_v52  ;;  %v2413_v48 = vrot.slane %v2640_v18, %v3385_v19  ;;  %v2417_v56 = vrot.slane %v2640_v18, %v3394_v22 }
0x1332   :  { %v2279_v53 = vpop.f32.mrf.mxu0  ;;  %v2322_v54 = vpop.f32.mrf.mxu1 }
0x1333   :  { %v2327_v60 = vadd.f32 %v2278_v51, %v2276_v50  ;;  %v2280_v61 = vadd.f32 %v2279_v53, %v1904_v45  ;;  %v2323_v20 = vadd.f32 %v2322_v54, %v1912_v49  ;;  %v2384_v45 = vrot.slane %v2639_v44, %v3385_v19 }
0x1334   :  { %v2281_v57 = vpop.f32.mrf.mxu0  ;;  %v2324_v29 = vpop.f32.mrf.mxu1 }
0x1335   :  { %v2282_v62 = vadd.f32 %v2281_v57, %v1908_v46  ;;  %v2328_v24 = vadd.f32 %v2327_v60, %v2319_v59  ;;  %v2325_v34 = vadd.f32 %v2324_v29, %v1916_v52  ;;  %v2388_v46 = vrot.slane %v2639_v44, %v3394_v22 }
0x1337   :  { %v2332_v39 = vadd.f32 %v2282_v62, %v2280_v61  ;;  %v2329_v55 = vadd.f32 %v2328_v24, %v2321_v58 }
0x1339   :  { %2330 = vadd.xlane.f32.xlu0 %v2329_v55  ;;  %v2333_v30 = vadd.f32 %v2332_v39, %v2323_v20 }
0x133b   :  { %v2334_v36 = vadd.f32 %v2333_v30, %v2325_v34 }
0x133d   :  { %2335 = vadd.xlane.f32.xlu1 %v2334_v36 }
0x13c2   :  { %v2331_v40 = vpop.xlane.xlu0 %2330 }
0x13c3   :  { %v2338_v63 = vmul.f32 0.001953125, %v2331_v40 }
0x13c5   :  { %v2340_v0 = vsub.f32 %v2276_v50, %v2338_v63  ;;  %v2341_v17 = vsub.f32 %v2278_v51, %v2338_v63  ;;  %v2342_v2 = vsub.f32 %v2319_v59, %v2338_v63  ;;  %v2343_v32 = vsub.f32 %v2321_v58, %v2338_v63 }
0x13c6   :  { %v2336_v3 = vpop.xlane.xlu1 %2335  ;;  %v2421_v50 = vrot.slane %v2640_v18, %v3391_v21  ;;  %v2425_v51 = vrot.slane %v2640_v18, %v3400_v28 }
0x13c7   :  { %v2339_v4 = vmul.f32 0.001953125, %v2336_v3  ;;  %v2348_v5 = vmul.f32 %v2340_v0, %v2340_v0  ;;  %v2349_v6 = vmul.f32 %v2341_v17, %v2341_v17  ;;  %v2350_v7 = vmul.f32 %v2342_v2, %v2342_v2 }
0x13c8   :  { %v2351_v10 = vmul.f32 %v2343_v32, %v2343_v32 }
0x13c9   :  { %v2344_v8 = vsub.f32 %v2280_v61, %v2339_v4  ;;  %v2345_v37 = vsub.f32 %v2282_v62, %v2339_v4  ;;  %v2356_v9 = vadd.f32 %v2349_v6, %v2348_v5  ;;  %v2346_v38 = vsub.f32 %v2323_v20, %v2339_v4 }
0x13ca   :  { %v2347_v12 = vsub.f32 %v2325_v34, %v2339_v4 }
0x13cb   :  { %v2357_v11 = vadd.f32 %v2356_v9, %v2350_v7  ;;  %v2352_v42 = vmul.f32 %v2344_v8, %v2344_v8  ;;  %v2353_v33 = vmul.f32 %v2345_v37, %v2345_v37  ;;  %v2354_v41 = vmul.f32 %v2346_v38, %v2346_v38 }
0x13cc   :  { %v2355_v15 = vmul.f32 %v2347_v12, %v2347_v12 }
0x13cd   :  { %v2358_v13 = vadd.f32 %v2357_v11, %v2351_v10  ;;  %v2361_v14 = vadd.f32 %v2353_v33, %v2352_v42 }
0x13cf   :  { %2359 = vadd.xlane.f32.xlu0 %v2358_v13  ;;  %v2362_v16 = vadd.f32 %v2361_v14, %v2354_v41 }
0x13d1   :  { %v2363_v23 = vadd.f32 %v2362_v16, %v2355_v15 }
0x13d3   :  { %2364 = vadd.xlane.f32.xlu1 %v2363_v23 }
0x1458   :  { %v2360_v25 = vpop.xlane.xlu0 %2359 }
0x1459   :  { %v2366_v26 = vmul.f32 0.001953125, %v2360_v25 }
0x145b   :  { %v2368_v27 = vadd.f32 1e-05, %v2366_v26 }
0x145c   :  { %v2365_v31 = vpop.xlane.xlu1 %2364 }
0x145d   :  { %3027 = vrsqrt.f32 %v2368_v27  ;;  %v2367_v35 = vmul.f32 0.001953125, %v2365_v31 }
0x145f   :  { %v2369_v43 = vadd.f32 1e-05, %v2367_v35 }
0x1461   :  { %3029 = vrsqrt.f32 %v2369_v43 }
0x146a   :  { %v3028_v49 = vpop.eup %3027 }
0x146b   :  { %v2372_v52 = vmul.f32 %v3028_v49, %v2340_v0  ;;  %v2373_v53 = vmul.f32 %v3028_v49, %v2341_v17  ;;  %v2374_v54 = vmul.f32 %v3028_v49, %v2342_v2  ;;  %v2375_v59 = vmul.f32 %v3028_v49, %v2343_v32 }
0x146d   :  { %v2401_v60 = vmul.f32 %v2384_v45, %v2372_v52  ;;  %v2402_v57 = vmul.f32 %v2388_v46, %v2373_v53  ;;  %v2403_v58 = vmul.f32 %v2392_v47, %v2374_v54  ;;  %v2404_v61 = vmul.f32 %v2396_v1, %v2375_v59 }
0x146e   :  { %v3030_v62 = vpop.eup %3029 }
0x146f   :  { %v2430_v24 = vadd.f32 %v2413_v48, %v2401_v60  ;;  %v2431_v29 = vadd.f32 %v2417_v56, %v2402_v57  ;;  %v2432_v20 = vadd.f32 %v2421_v50, %v2403_v58  ;;  %v2433_v39 = vadd.f32 %v2425_v51, %v2404_v61 }
0x1470   :  { %v2376_v19 = vmul.f32 %v3030_v62, %v2344_v8  ;;  %v2377_v55 = vmul.f32 %v3030_v62, %v2345_v37  ;;  %v2378_v22 = vmul.f32 %v3030_v62, %v2346_v38  ;;  %v2379_v34 = vmul.f32 %v3030_v62, %v2347_v12 }
0x1471   :  { %v2438_v21 = vmax.f32 %v2430_v24, 0.0  ;;  %v2439_v30 = vmax.f32 %v2431_v29, 0.0  ;;  %v2440_v28 = vmax.f32 %v2432_v20, 0.0  ;;  %v2441_v17 = vmax.f32 %v2433_v39, 0.0 }
0x1472   :  { %v2405_v36 = vmul.f32 %v2384_v45, %v2376_v19  ;;  %v2406_v40 = vmul.f32 %v2388_v46, %v2377_v55  ;;  %v2407_v63 = vmul.f32 %v2392_v47, %v2378_v22  ;;  %v2408_v0 = vmul.f32 %v2396_v1, %v2379_v34 }
0x1473   :  { %v2446_v2 = vmul.f32 %v2438_v21, %v2438_v21  ;;  %v2447_v3 = vmul.f32 %v2439_v30, %v2439_v30  ;;  %v2448_v7 = vmul.f32 %v2440_v28, %v2440_v28  ;;  %v2449_v10 = vmul.f32 %v2441_v17, %v2441_v17 }
0x1474   :  { %v2434_v32 = vadd.f32 %v2413_v48, %v2405_v36  ;;  %v2435_v4 = vadd.f32 %v2417_v56, %v2406_v40  ;;  %v2436_v5 = vadd.f32 %v2421_v50, %v2407_v63  ;;  %v2437_v6 = vadd.f32 %v2425_v51, %v2408_v0 }
0x1475   :  { %v2454_v9 = vadd.f32 %v2447_v3, %v2446_v2 }
0x1476   :  { %v2442_v8 = vmax.f32 %v2434_v32, 0.0  ;;  %v2443_v37 = vmax.f32 %v2435_v4, 0.0  ;;  %v2444_v38 = vmax.f32 %v2436_v5, 0.0  ;;  %v2445_v12 = vmax.f32 %v2437_v6, 0.0 }
0x1477   :  { %v2455_v11 = vadd.f32 %v2454_v9, %v2448_v7 }
0x1478   :  { %v2450_v42 = vmul.f32 %v2442_v8, %v2442_v8  ;;  %v2451_v33 = vmul.f32 %v2443_v37, %v2443_v37  ;;  %v2452_v41 = vmul.f32 %v2444_v38, %v2444_v38  ;;  %v2453_v15 = vmul.f32 %v2445_v12, %v2445_v12 }
0x1479   :  { %v2456_v13 = vadd.f32 %v2455_v11, %v2449_v10 }
0x147a   :  { %v2459_v14 = vadd.f32 %v2451_v33, %v2450_v42 }
0x147b   :  { %2457 = vadd.xlane.f32.xlu0 %v2456_v13 }
0x147c   :  { %v2460_v16 = vadd.f32 %v2459_v14, %v2452_v41 }
0x147e   :  { %v2461_v23 = vadd.f32 %v2460_v16, %v2453_v15 }
0x1480   :  { %2462 = vadd.xlane.f32.xlu1 %v2461_v23 }
0x1481   :  { %3086 = shalt.err (!%p3083_p0)
}
0x1482   :  { %s3132_s23 = smov 512   ;;  %s3133_s24 = smov 32  }
0x1483   :  { %2495 = dma.vmem_to_hbm [thread:$0]  %s2490_s21, 1024, %s3660_s7, [#allocation5], %s3132_s23, %s3132_s23, %s3133_s24  }
0x1484   :  { %s3134_s26 = smov [#allocation9]  }
0x1485   :  { %s2501_s27 = sshll.u32 %s3134_s26, 4  ;;  %s2502_s27 = int_to_ptr.vmem [resolvable:$true] %s2501_s27 }
0x1486   :  { %s3095_s7 = scalar_lea.vmem %s2502_s27, 1024  ;;  %p3100_p2 = scmp.lt.s32.totalorder %s2502_s27, %s2502_s27 }
0x1487   :  { %p3096_p1 = scmp.ne.s32.totalorder %s2502_s27, %s3095_s7  ;;  %p3101_p3 = scmp.lt.s32.totalorder %s3095_s7, %s3095_s7 }
0x1489   :  { %p3102_p4 = por %p3101_p3, %p3100_p2 }
0x148b   :  { %p3103_p5 = pnand %p3102_p4, %p3096_p1 }
0x1504   :  { %v2458_v25 = vpop.xlane.xlu0 %2457 }
0x1505   :  { %v2464_v26 = vmax.f32 %v2458_v25, 1e-24 }
0x1507   :  { %3031 = vrsqrt.f32 %v2464_v26 }
0x1509   :  { %v2463_v27 = vpop.xlane.xlu1 %2462 }
0x150a   :  { %v2465_v31 = vmax.f32 %v2463_v27, 1e-24 }
0x150c   :  { %3033 = vrsqrt.f32 %v2465_v31 }
0x1514   :  { %v3032_v35 = vpop.eup %3031 }
0x1515   :  { %v2468_v43 = vmul.f32 %v3032_v35, %v2438_v21  ;;  %v2469_v44 = vmul.f32 %v3032_v35, %v2439_v30  ;;  %v2470_v18 = vmul.f32 %v3032_v35, %v2440_v28  ;;  %v2471_v45 = vmul.f32 %v3032_v35, %v2441_v17 }
0x1517   :  { %2476 = vst [vmem:[#allocation9] sm:$0xff] %v2468_v43  ;;  %2477 = vst [vmem:[#allocation9 + $0x8] sm:$0xff] %v2469_v44 }
0x1518   :  { %2478 = vst [vmem:[#allocation9 + $0x10] sm:$0xff] %v2470_v18  ;;  %2479 = vst [vmem:[#allocation9 + $0x18] sm:$0xff] %v2471_v45 }
0x1519   :  { %v3034_v46 = vpop.eup %3033 }
0x151a   :  { %v2472_v47 = vmul.f32 %v3034_v46, %v2442_v8  ;;  %v2473_v1 = vmul.f32 %v3034_v46, %v2443_v37  ;;  %v2474_v49 = vmul.f32 %v3034_v46, %v2444_v38  ;;  %v2475_v48 = vmul.f32 %v3034_v46, %v2445_v12 }
0x151c   :  { %2480 = vst [vmem:[#allocation9 + $0x20] sm:$0xff] %v2472_v47  ;;  %2481 = vst [vmem:[#allocation9 + $0x28] sm:$0xff] %v2473_v1 }
0x151d   :  { %2482 = vst [vmem:[#allocation9 + $0x30] sm:$0xff] %v2474_v49  ;;  %2483 = vst [vmem:[#allocation9 + $0x38] sm:$0xff] %v2475_v48 }
0x151e   :  { %3106 = shalt.err (!%p3103_p5)
}
0x151f   :  { %2507 = dma.vmem_to_hbm [thread:$0]  %s2502_s27, 1024, %s3661_s8, [#allocation10], %s3132_s23, %s3132_s23, %s3133_s24  }
0x1520   :  { %3119 = dma.done.wait [#allocation5], 1024  }
0x1521   :  { %3120 = vsyncadd [#allocation5], 4294966272 }
0x1522   :  { %3121 = dma.done.wait [#allocation10], 1024  }
0x1523   :  { %3122 = vsyncadd [#allocation10], 4294966272 }
0x1524   :  { %2514 = vsyncpa [#allocation4], 1 }
0x1525   :  { %2515 = vsyncpa [#allocation7], 1 }
0x1526   :  { %2516 = vsyncpa [#allocation5], 1 }
0x1527   :  { %2517 = vsyncpa [#allocation10], 1 }

</bundles_post_ra>
